<compile_context>
chip_gen: v5e
topology: v5e:2x2
jax: 0.10.0
libtpu: 0.0.40
codegen_flags: <defaults>
</compile_context>

<pallas_src>
import functools

import jax
import jax.numpy as jnp
from jax.experimental import pallas as pl
from jax.experimental.pallas import tpu as pltpu

K = 7      # kernel size
PAD = 3    # padding


def _shift_flat(arr, s):
    """out[..., i] = arr[..., i + s] if 0 <= i + s < L else 0 (static s)."""
    if s == 0:
        return arr
    lead, L = arr.shape[0], arr.shape[-1]
    if abs(s) >= L:                       # degenerate tiny-image guard
        return jnp.zeros_like(arr)
    zeros = jnp.zeros((lead, abs(s)), arr.dtype)
    if s > 0:
        return jnp.concatenate([arr[:, s:], zeros], axis=-1)
    return jnp.concatenate([zeros, arr[:, :L + s]], axis=-1)


def _spatial_attn_kernel(x_ref, w_ref, b_ref, xmask_ref, o_ref, *, C, W):
    """One grid step: TB images, spatial dims flattened onto the lane axis.

    x_ref:     (TB, C, H*W)   VMEM, input dtype
    w_ref:     (2*K*K,)       SMEM f32, folded DOConv weight, order [c, ky, kx]
    b_ref:     (1,)           SMEM f32, conv bias
    xmask_ref: (K, H*W)       VMEM f32, per-kx column-validity masks (0/1)
    o_ref:     (TB, 1, H*W)   VMEM, output dtype
    """
    # ---- mean / max over channels: per-channel loads, f32 accumulation ------
    ch = x_ref[:, 0, :].astype(jnp.float32)              # (TB, HW)
    csum = ch
    cmax = ch
    for c in range(1, C):
        ch = x_ref[:, c, :].astype(jnp.float32)
        csum = csum + ch
        cmax = jnp.maximum(cmax, ch)
    maps = (csum * jnp.float32(1.0 / C), cmax)            # (avg, max) = cat order

    # ---- hoist invariants out of the tap loops -------------------------------
    wv = [[[w_ref[(c * K + ky) * K + kx] for kx in range(K)]   # 98 SMEM scalars
           for ky in range(K)] for c in range(2)]
    xm = xmask_ref[...]                                    # (K, HW) 0/1 masks

    # 14 column-shifted (+ masked) copies of the two maps: every lane shift of
    # the conv happens here, once, in registers (no per-tap unaligned slices).
    # The per-kx mask zeroes columns whose horizontal neighbour falls outside
    # the image row (== horizontal zero padding for the flattened layout).
    xs = []
    for c in range(2):
        per_kx = []
        for kx in range(K):
            s = kx - PAD
            shifted = _shift_flat(maps[c], s)
            if s != 0:
                shifted = shifted * xm[kx:kx + 1, :]
            per_kx.append(shifted)
        xs.append(per_kx)

    # ---- 7x7 conv -------------------------------------------------------------
    # For each kernel row ky: weighted sum of the 14 shifted copies (pure VALU,
    # one accumulator per input channel for ILP), then shift the combined term
    # by (ky - PAD) image rows with zero fill (== vertical zero padding) and
    # reduce the 7 row terms with a balanced tree.
    row_terms = []
    for ky in range(K):
        acc0 = xs[0][0] * wv[0][ky][0]
        acc1 = xs[1][0] * wv[1][ky][0]
        for kx in range(1, K):
            acc0 = acc0 + xs[0][kx] * wv[0][ky][kx]
            acc1 = acc1 + xs[1][kx] * wv[1][ky][kx]
        row_terms.append(_shift_flat(acc0 + acc1, (ky - PAD) * W))
    while len(row_terms) > 1:
        nxt = [row_terms[i] + row_terms[i + 1]
               for i in range(0, len(row_terms) - 1, 2)]
        if len(row_terms) % 2:
            nxt.append(row_terms[-1])
        row_terms = nxt
    conv = row_terms[0] + b_ref[0]

    o_ref[:, 0, :] = jax.nn.sigmoid(conv).astype(o_ref.dtype)


def _pick_block_batch(B, C, HW, itemsize):
    """Images per grid step.

    Amortizes the ~0.35us per-step overhead without (a) blowing the
    double-buffered input block past a small VMEM budget, (b) dropping below
    2 grid steps when B > 1 (keeps both TensorCores busy on v7x megacore), or
    (c) pushing the 14+ hoisted f32 copies (16 * tb * HW * 4 bytes live) past
    the 256 KiB vector register file (which would force VMEM spills).
    """
    best = 1
    for cand in range(1, B + 1):
        if B % cand:
            continue
        if cand > 4:                                   # vreg-pressure cap
            break
        if B > 1 and B // cand < 2:                    # keep >= 2 grid steps
            break
        if 2 * cand * C * HW * itemsize > (4 << 20):   # double-buffered input
            break
        best = cand
    return best


def spatial_attention(x, w_eff, bias):
    """x: (B, C, H, W); w_eff: (1, 2, 7, 7) folded DOConv weight; bias: (1,)."""
    B, C, H, W = x.shape
    HW = H * W
    # TODO(synk): for very large H*W an H-tiled variant (3-row halo per tile)
    # would be needed to bound per-step VMEM on v7x; not required at these sizes.

    x_flat = x.reshape(B, C, HW)                      # free: merges trailing dims
    w_flat = w_eff.reshape(-1).astype(jnp.float32)    # (2*K*K,), order [c, ky, kx]
    b = bias.reshape(1).astype(jnp.float32)

    # Per-kx column-validity masks (precomputed once outside the kernel).
    col = jnp.arange(HW, dtype=jnp.int32) % W
    off = jnp.arange(K, dtype=jnp.int32)[:, None] - PAD
    xmask = ((col[None, :] + off >= 0) &
             (col[None, :] + off < W)).astype(jnp.float32)        # (K, HW)

    tb = _pick_block_batch(B, C, HW, x.dtype.itemsize)
    grid = (B // tb,)

    kernel = functools.partial(_spatial_attn_kernel, C=C, W=W)
    out_flat = pl.pallas_call(
        kernel,
        out_shape=jax.ShapeDtypeStruct((B, 1, HW), x.dtype),
        grid=grid,
        in_specs=[
            pl.BlockSpec((tb, C, HW), lambda i: (i, 0, 0)),
            pl.BlockSpec(memory_space=pltpu.MemorySpace.SMEM),
            pl.BlockSpec(memory_space=pltpu.MemorySpace.SMEM),
            pl.BlockSpec((K, HW), lambda i: (0, 0)),
        ],
        out_specs=pl.BlockSpec((tb, 1, HW), lambda i: (i, 0, 0)),
        compiler_params=pltpu.CompilerParams(
            dimension_semantics=("parallel",),
            vmem_limit_bytes=32 * 1024 * 1024,
        ),
    )(x_flat, w_flat, b, xmask)
    return out_flat.reshape(B, 1, H, W)


def make_doconv_params(key, in_channels=2, out_channels=1, M=7, N=7):
    """Deterministic synthetic DOConv2d params, folded to a plain conv weight."""
    D_mul = M * N
    k1, k2, k3 = jax.random.split(key, 3)
    # W: (out, in // groups, D_mul)
    Wp = jax.random.normal(k1, (out_channels, in_channels, D_mul), jnp.float32) * 0.1
    # D: (in, M*N, D_mul) -- zeros in the paper init; small random here so the
    # over-parameterization path actually contributes. D_diag is the identity.
    Dp = jax.random.normal(k2, (in_channels, M * N, D_mul), jnp.float32) * 0.02
    D_diag = jnp.tile(jnp.eye(M * N, dtype=jnp.float32)[None, :, :],
                      (in_channels, 1, D_mul // (M * N)))
    bias = jax.random.normal(k3, (out_channels,), jnp.float32) * 0.1
    # DoW = einsum('ims,ois->oim', D + D_diag, W) reshaped to (O, I, M, N)
    DoW = jnp.einsum('ims,ois->oim', Dp + D_diag,
                     Wp.reshape(out_channels, in_channels, D_mul))
    w_eff = DoW.reshape(out_channels, in_channels, M, N)
    return w_eff, bias


def reference(x, w_eff, bias):
    """Plain-JAX reference of the PyTorch forward."""
    avg = jnp.mean(x, axis=1, keepdims=True)
    mx = jnp.max(x, axis=1, keepdims=True)
    out = jnp.concatenate([avg, mx], axis=1)
    conv = jax.lax.conv_general_dilated(
        out, w_eff, window_strides=(1, 1), padding=[(PAD, PAD), (PAD, PAD)],
        dimension_numbers=("NCHW", "OIHW", "NCHW"))
    return jax.nn.sigmoid(conv + bias.reshape(1, -1, 1, 1))


if __name__ == "__main__":
    key = jax.random.PRNGKey(0)
    kx, kp = jax.random.split(key)

    B, C, H, W = 2, 4, 16, 16
    x = jax.random.normal(kx, (B, C, H, W), jnp.float32)
    w_eff, bias = make_doconv_params(kp)

    out = spatial_attention(x, w_eff, bias)
    out = jax.block_until_ready(out)

    ref = reference(x, w_eff, bias)
    assert out.shape == (B, 1, H, W), out.shape
    assert jnp.allclose(out, ref, atol=1e-4, rtol=1e-4), \
        float(jnp.max(jnp.abs(out - ref)))

    print("KERNEL_OK")
</pallas_src>

<mosaic_0001>
module attributes {stable_mosaic.version = 11 : i64} {
  func.func @_spatial_attn_kernel(%arg0: i32, %arg1: memref<1x4x256xf32, #tpu.memory_space<vmem>>, %arg2: memref<98xf32, #tpu.memory_space<smem>>, %arg3: memref<1xf32, #tpu.memory_space<smem>>, %arg4: memref<7x256xf32, #tpu.memory_space<vmem>>, %arg5: memref<1x1x256xf32, #tpu.memory_space<vmem>>) attributes {dimension_semantics = [#tpu.dimension_semantics<parallel>], iteration_bounds = array<i64: 2>, scalar_prefetch = 0 : i64, scratch_operands = 0 : i64, tpu.core_type = #tpu.core_type<tc>, window_params = [{transform_indices = @transform_0, window_bounds = array<i64: 1, 4, 256>}, {transform_indices = @transform_1, window_bounds = array<i64: 98>}, {transform_indices = @transform_2, window_bounds = array<i64: 1>}, {pipeline_mode = #tpu.pipeline_mode<synchronous>, transform_indices = @transform_3, window_bounds = array<i64: 7, 256>}, {transform_indices = @transform_4, window_bounds = array<i64: 1, 1, 256>}]} {
    %c0 = arith.constant 0 : index
    %c0_0 = arith.constant 0 : index
    %c0_1 = arith.constant 0 : index
    %0 = vector.load %arg1[%c0, %c0_0, %c0_1] : memref<1x4x256xf32, #tpu.memory_space<vmem>>, vector<1x1x256xf32>
    %1 = vector.shape_cast %0 : vector<1x1x256xf32> to vector<1x256xf32>
    %c0_2 = arith.constant 0 : index
    %c1 = arith.constant 1 : index
    %c0_3 = arith.constant 0 : index
    %2 = vector.load %arg1[%c0_2, %c1, %c0_3] : memref<1x4x256xf32, #tpu.memory_space<vmem>>, vector<1x1x256xf32>
    %3 = vector.shape_cast %2 : vector<1x1x256xf32> to vector<1x256xf32>
    %4 = arith.addf %1, %3 : vector<1x256xf32>
    %5 = arith.maximumf %1, %3 : vector<1x256xf32>
    %c0_4 = arith.constant 0 : index
    %c2 = arith.constant 2 : index
    %c0_5 = arith.constant 0 : index
    %6 = vector.load %arg1[%c0_4, %c2, %c0_5] : memref<1x4x256xf32, #tpu.memory_space<vmem>>, vector<1x1x256xf32>
    %7 = vector.shape_cast %6 : vector<1x1x256xf32> to vector<1x256xf32>
    %8 = arith.addf %4, %7 : vector<1x256xf32>
    %9 = arith.maximumf %5, %7 : vector<1x256xf32>
    %c0_6 = arith.constant 0 : index
    %c3 = arith.constant 3 : index
    %c0_7 = arith.constant 0 : index
    %10 = vector.load %arg1[%c0_6, %c3, %c0_7] : memref<1x4x256xf32, #tpu.memory_space<vmem>>, vector<1x1x256xf32>
    %11 = vector.shape_cast %10 : vector<1x1x256xf32> to vector<1x256xf32>
    %12 = arith.addf %8, %11 : vector<1x256xf32>
    %13 = arith.maximumf %9, %11 : vector<1x256xf32>
    %cst = arith.constant 2.500000e-01 : f32
    %14 = vector.broadcast %cst : f32 to vector<1x256xf32>
    %15 = arith.mulf %12, %14 : vector<1x256xf32>
    %c0_8 = arith.constant 0 : index
    %16 = memref.load %arg2[%c0_8] : memref<98xf32, #tpu.memory_space<smem>>
    %c1_9 = arith.constant 1 : index
    %17 = memref.load %arg2[%c1_9] : memref<98xf32, #tpu.memory_space<smem>>
    %c2_10 = arith.constant 2 : index
    %18 = memref.load %arg2[%c2_10] : memref<98xf32, #tpu.memory_space<smem>>
    %c3_11 = arith.constant 3 : index
    %19 = memref.load %arg2[%c3_11] : memref<98xf32, #tpu.memory_space<smem>>
    %c4 = arith.constant 4 : index
    %20 = memref.load %arg2[%c4] : memref<98xf32, #tpu.memory_space<smem>>
    %c5 = arith.constant 5 : index
    %21 = memref.load %arg2[%c5] : memref<98xf32, #tpu.memory_space<smem>>
    %c6 = arith.constant 6 : index
    %22 = memref.load %arg2[%c6] : memref<98xf32, #tpu.memory_space<smem>>
    %c7 = arith.constant 7 : index
    %23 = memref.load %arg2[%c7] : memref<98xf32, #tpu.memory_space<smem>>
    %c8 = arith.constant 8 : index
    %24 = memref.load %arg2[%c8] : memref<98xf32, #tpu.memory_space<smem>>
    %c9 = arith.constant 9 : index
    %25 = memref.load %arg2[%c9] : memref<98xf32, #tpu.memory_space<smem>>
    %c10 = arith.constant 10 : index
    %26 = memref.load %arg2[%c10] : memref<98xf32, #tpu.memory_space<smem>>
    %c11 = arith.constant 11 : index
    %27 = memref.load %arg2[%c11] : memref<98xf32, #tpu.memory_space<smem>>
    %c12 = arith.constant 12 : index
    %28 = memref.load %arg2[%c12] : memref<98xf32, #tpu.memory_space<smem>>
    %c13 = arith.constant 13 : index
    %29 = memref.load %arg2[%c13] : memref<98xf32, #tpu.memory_space<smem>>
    %c14 = arith.constant 14 : index
    %30 = memref.load %arg2[%c14] : memref<98xf32, #tpu.memory_space<smem>>
    %c15 = arith.constant 15 : index
    %31 = memref.load %arg2[%c15] : memref<98xf32, #tpu.memory_space<smem>>
    %c16 = arith.constant 16 : index
    %32 = memref.load %arg2[%c16] : memref<98xf32, #tpu.memory_space<smem>>
    %c17 = arith.constant 17 : index
    %33 = memref.load %arg2[%c17] : memref<98xf32, #tpu.memory_space<smem>>
    %c18 = arith.constant 18 : index
    %34 = memref.load %arg2[%c18] : memref<98xf32, #tpu.memory_space<smem>>
    %c19 = arith.constant 19 : index
    %35 = memref.load %arg2[%c19] : memref<98xf32, #tpu.memory_space<smem>>
    %c20 = arith.constant 20 : index
    %36 = memref.load %arg2[%c20] : memref<98xf32, #tpu.memory_space<smem>>
    %c21 = arith.constant 21 : index
    %37 = memref.load %arg2[%c21] : memref<98xf32, #tpu.memory_space<smem>>
    %c22 = arith.constant 22 : index
    %38 = memref.load %arg2[%c22] : memref<98xf32, #tpu.memory_space<smem>>
    %c23 = arith.constant 23 : index
    %39 = memref.load %arg2[%c23] : memref<98xf32, #tpu.memory_space<smem>>
    %c24 = arith.constant 24 : index
    %40 = memref.load %arg2[%c24] : memref<98xf32, #tpu.memory_space<smem>>
    %c25 = arith.constant 25 : index
    %41 = memref.load %arg2[%c25] : memref<98xf32, #tpu.memory_space<smem>>
    %c26 = arith.constant 26 : index
    %42 = memref.load %arg2[%c26] : memref<98xf32, #tpu.memory_space<smem>>
    %c27 = arith.constant 27 : index
    %43 = memref.load %arg2[%c27] : memref<98xf32, #tpu.memory_space<smem>>
    %c28 = arith.constant 28 : index
    %44 = memref.load %arg2[%c28] : memref<98xf32, #tpu.memory_space<smem>>
    %c29 = arith.constant 29 : index
    %45 = memref.load %arg2[%c29] : memref<98xf32, #tpu.memory_space<smem>>
    %c30 = arith.constant 30 : index
    %46 = memref.load %arg2[%c30] : memref<98xf32, #tpu.memory_space<smem>>
    %c31 = arith.constant 31 : index
    %47 = memref.load %arg2[%c31] : memref<98xf32, #tpu.memory_space<smem>>
    %c32 = arith.constant 32 : index
    %48 = memref.load %arg2[%c32] : memref<98xf32, #tpu.memory_space<smem>>
    %c33 = arith.constant 33 : index
    %49 = memref.load %arg2[%c33] : memref<98xf32, #tpu.memory_space<smem>>
    %c34 = arith.constant 34 : index
    %50 = memref.load %arg2[%c34] : memref<98xf32, #tpu.memory_space<smem>>
    %c35 = arith.constant 35 : index
    %51 = memref.load %arg2[%c35] : memref<98xf32, #tpu.memory_space<smem>>
    %c36 = arith.constant 36 : index
    %52 = memref.load %arg2[%c36] : memref<98xf32, #tpu.memory_space<smem>>
    %c37 = arith.constant 37 : index
    %53 = memref.load %arg2[%c37] : memref<98xf32, #tpu.memory_space<smem>>
    %c38 = arith.constant 38 : index
    %54 = memref.load %arg2[%c38] : memref<98xf32, #tpu.memory_space<smem>>
    %c39 = arith.constant 39 : index
    %55 = memref.load %arg2[%c39] : memref<98xf32, #tpu.memory_space<smem>>
    %c40 = arith.constant 40 : index
    %56 = memref.load %arg2[%c40] : memref<98xf32, #tpu.memory_space<smem>>
    %c41 = arith.constant 41 : index
    %57 = memref.load %arg2[%c41] : memref<98xf32, #tpu.memory_space<smem>>
    %c42 = arith.constant 42 : index
    %58 = memref.load %arg2[%c42] : memref<98xf32, #tpu.memory_space<smem>>
    %c43 = arith.constant 43 : index
    %59 = memref.load %arg2[%c43] : memref<98xf32, #tpu.memory_space<smem>>
    %c44 = arith.constant 44 : index
    %60 = memref.load %arg2[%c44] : memref<98xf32, #tpu.memory_space<smem>>
    %c45 = arith.constant 45 : index
    %61 = memref.load %arg2[%c45] : memref<98xf32, #tpu.memory_space<smem>>
    %c46 = arith.constant 46 : index
    %62 = memref.load %arg2[%c46] : memref<98xf32, #tpu.memory_space<smem>>
    %c47 = arith.constant 47 : index
    %63 = memref.load %arg2[%c47] : memref<98xf32, #tpu.memory_space<smem>>
    %c48 = arith.constant 48 : index
    %64 = memref.load %arg2[%c48] : memref<98xf32, #tpu.memory_space<smem>>
    %c49 = arith.constant 49 : index
    %65 = memref.load %arg2[%c49] : memref<98xf32, #tpu.memory_space<smem>>
    %c50 = arith.constant 50 : index
    %66 = memref.load %arg2[%c50] : memref<98xf32, #tpu.memory_space<smem>>
    %c51 = arith.constant 51 : index
    %67 = memref.load %arg2[%c51] : memref<98xf32, #tpu.memory_space<smem>>
    %c52 = arith.constant 52 : index
    %68 = memref.load %arg2[%c52] : memref<98xf32, #tpu.memory_space<smem>>
    %c53 = arith.constant 53 : index
    %69 = memref.load %arg2[%c53] : memref<98xf32, #tpu.memory_space<smem>>
    %c54 = arith.constant 54 : index
    %70 = memref.load %arg2[%c54] : memref<98xf32, #tpu.memory_space<smem>>
    %c55 = arith.constant 55 : index
    %71 = memref.load %arg2[%c55] : memref<98xf32, #tpu.memory_space<smem>>
    %c56 = arith.constant 56 : index
    %72 = memref.load %arg2[%c56] : memref<98xf32, #tpu.memory_space<smem>>
    %c57 = arith.constant 57 : index
    %73 = memref.load %arg2[%c57] : memref<98xf32, #tpu.memory_space<smem>>
    %c58 = arith.constant 58 : index
    %74 = memref.load %arg2[%c58] : memref<98xf32, #tpu.memory_space<smem>>
    %c59 = arith.constant 59 : index
    %75 = memref.load %arg2[%c59] : memref<98xf32, #tpu.memory_space<smem>>
    %c60 = arith.constant 60 : index
    %76 = memref.load %arg2[%c60] : memref<98xf32, #tpu.memory_space<smem>>
    %c61 = arith.constant 61 : index
    %77 = memref.load %arg2[%c61] : memref<98xf32, #tpu.memory_space<smem>>
    %c62 = arith.constant 62 : index
    %78 = memref.load %arg2[%c62] : memref<98xf32, #tpu.memory_space<smem>>
    %c63 = arith.constant 63 : index
    %79 = memref.load %arg2[%c63] : memref<98xf32, #tpu.memory_space<smem>>
    %c64 = arith.constant 64 : index
    %80 = memref.load %arg2[%c64] : memref<98xf32, #tpu.memory_space<smem>>
    %c65 = arith.constant 65 : index
    %81 = memref.load %arg2[%c65] : memref<98xf32, #tpu.memory_space<smem>>
    %c66 = arith.constant 66 : index
    %82 = memref.load %arg2[%c66] : memref<98xf32, #tpu.memory_space<smem>>
    %c67 = arith.constant 67 : index
    %83 = memref.load %arg2[%c67] : memref<98xf32, #tpu.memory_space<smem>>
    %c68 = arith.constant 68 : index
    %84 = memref.load %arg2[%c68] : memref<98xf32, #tpu.memory_space<smem>>
    %c69 = arith.constant 69 : index
    %85 = memref.load %arg2[%c69] : memref<98xf32, #tpu.memory_space<smem>>
    %c70 = arith.constant 70 : index
    %86 = memref.load %arg2[%c70] : memref<98xf32, #tpu.memory_space<smem>>
    %c71 = arith.constant 71 : index
    %87 = memref.load %arg2[%c71] : memref<98xf32, #tpu.memory_space<smem>>
    %c72 = arith.constant 72 : index
    %88 = memref.load %arg2[%c72] : memref<98xf32, #tpu.memory_space<smem>>
    %c73 = arith.constant 73 : index
    %89 = memref.load %arg2[%c73] : memref<98xf32, #tpu.memory_space<smem>>
    %c74 = arith.constant 74 : index
    %90 = memref.load %arg2[%c74] : memref<98xf32, #tpu.memory_space<smem>>
    %c75 = arith.constant 75 : index
    %91 = memref.load %arg2[%c75] : memref<98xf32, #tpu.memory_space<smem>>
    %c76 = arith.constant 76 : index
    %92 = memref.load %arg2[%c76] : memref<98xf32, #tpu.memory_space<smem>>
    %c77 = arith.constant 77 : index
    %93 = memref.load %arg2[%c77] : memref<98xf32, #tpu.memory_space<smem>>
    %c78 = arith.constant 78 : index
    %94 = memref.load %arg2[%c78] : memref<98xf32, #tpu.memory_space<smem>>
    %c79 = arith.constant 79 : index
    %95 = memref.load %arg2[%c79] : memref<98xf32, #tpu.memory_space<smem>>
    %c80 = arith.constant 80 : index
    %96 = memref.load %arg2[%c80] : memref<98xf32, #tpu.memory_space<smem>>
    %c81 = arith.constant 81 : index
    %97 = memref.load %arg2[%c81] : memref<98xf32, #tpu.memory_space<smem>>
    %c82 = arith.constant 82 : index
    %98 = memref.load %arg2[%c82] : memref<98xf32, #tpu.memory_space<smem>>
    %c83 = arith.constant 83 : index
    %99 = memref.load %arg2[%c83] : memref<98xf32, #tpu.memory_space<smem>>
    %c84 = arith.constant 84 : index
    %100 = memref.load %arg2[%c84] : memref<98xf32, #tpu.memory_space<smem>>
    %c85 = arith.constant 85 : index
    %101 = memref.load %arg2[%c85] : memref<98xf32, #tpu.memory_space<smem>>
    %c86 = arith.constant 86 : index
    %102 = memref.load %arg2[%c86] : memref<98xf32, #tpu.memory_space<smem>>
    %c87 = arith.constant 87 : index
    %103 = memref.load %arg2[%c87] : memref<98xf32, #tpu.memory_space<smem>>
    %c88 = arith.constant 88 : index
    %104 = memref.load %arg2[%c88] : memref<98xf32, #tpu.memory_space<smem>>
    %c89 = arith.constant 89 : index
    %105 = memref.load %arg2[%c89] : memref<98xf32, #tpu.memory_space<smem>>
    %c90 = arith.constant 90 : index
    %106 = memref.load %arg2[%c90] : memref<98xf32, #tpu.memory_space<smem>>
    %c91 = arith.constant 91 : index
    %107 = memref.load %arg2[%c91] : memref<98xf32, #tpu.memory_space<smem>>
    %c92 = arith.constant 92 : index
    %108 = memref.load %arg2[%c92] : memref<98xf32, #tpu.memory_space<smem>>
    %c93 = arith.constant 93 : index
    %109 = memref.load %arg2[%c93] : memref<98xf32, #tpu.memory_space<smem>>
    %c94 = arith.constant 94 : index
    %110 = memref.load %arg2[%c94] : memref<98xf32, #tpu.memory_space<smem>>
    %c95 = arith.constant 95 : index
    %111 = memref.load %arg2[%c95] : memref<98xf32, #tpu.memory_space<smem>>
    %c96 = arith.constant 96 : index
    %112 = memref.load %arg2[%c96] : memref<98xf32, #tpu.memory_space<smem>>
    %c97 = arith.constant 97 : index
    %113 = memref.load %arg2[%c97] : memref<98xf32, #tpu.memory_space<smem>>
    %c0_12 = arith.constant 0 : index
    %c0_13 = arith.constant 0 : index
    %114 = vector.load %arg4[%c0_12, %c0_13] : memref<7x256xf32, #tpu.memory_space<vmem>>, vector<7x256xf32>
    %cst_14 = arith.constant 0.000000e+00 : f32
    %115 = vector.broadcast %cst_14 : f32 to vector<1x3xf32>
    %116 = vector.extract_strided_slice %15 {offsets = [0, 0], sizes = [1, 253], strides = [1, 1]} : vector<1x256xf32> to vector<1x253xf32>
    %117 = tpu.concatenate %115, %116 in 1 : vector<1x3xf32>, vector<1x253xf32> -> vector<1x256xf32>
    %118 = vector.extract_strided_slice %114 {offsets = [0, 0], sizes = [1, 256], strides = [1, 1]} : vector<7x256xf32> to vector<1x256xf32>
    %119 = arith.mulf %117, %118 : vector<1x256xf32>
    %cst_15 = arith.constant 0.000000e+00 : f32
    %120 = vector.broadcast %cst_15 : f32 to vector<1x2xf32>
    %121 = vector.extract_strided_slice %15 {offsets = [0, 0], sizes = [1, 254], strides = [1, 1]} : vector<1x256xf32> to vector<1x254xf32>
    %122 = tpu.concatenate %120, %121 in 1 : vector<1x2xf32>, vector<1x254xf32> -> vector<1x256xf32>
    %123 = vector.extract_strided_slice %114 {offsets = [1, 0], sizes = [1, 256], strides = [1, 1]} : vector<7x256xf32> to vector<1x256xf32>
    %124 = arith.mulf %122, %123 : vector<1x256xf32>
    %cst_16 = arith.constant 0.000000e+00 : f32
    %125 = vector.broadcast %cst_16 : f32 to vector<1x1xf32>
    %126 = vector.extract_strided_slice %15 {offsets = [0, 0], sizes = [1, 255], strides = [1, 1]} : vector<1x256xf32> to vector<1x255xf32>
    %127 = tpu.concatenate %125, %126 in 1 : vector<1x1xf32>, vector<1x255xf32> -> vector<1x256xf32>
    %128 = vector.extract_strided_slice %114 {offsets = [2, 0], sizes = [1, 256], strides = [1, 1]} : vector<7x256xf32> to vector<1x256xf32>
    %129 = arith.mulf %127, %128 : vector<1x256xf32>
    %cst_17 = arith.constant 0.000000e+00 : f32
    %130 = vector.broadcast %cst_17 : f32 to vector<1x1xf32>
    %131 = vector.extract_strided_slice %15 {offsets = [0, 1], sizes = [1, 255], strides = [1, 1]} : vector<1x256xf32> to vector<1x255xf32>
    %132 = tpu.concatenate %131, %130 in 1 : vector<1x255xf32>, vector<1x1xf32> -> vector<1x256xf32>
    %133 = vector.extract_strided_slice %114 {offsets = [4, 0], sizes = [1, 256], strides = [1, 1]} : vector<7x256xf32> to vector<1x256xf32>
    %134 = arith.mulf %132, %133 : vector<1x256xf32>
    %cst_18 = arith.constant 0.000000e+00 : f32
    %135 = vector.broadcast %cst_18 : f32 to vector<1x2xf32>
    %136 = vector.extract_strided_slice %15 {offsets = [0, 2], sizes = [1, 254], strides = [1, 1]} : vector<1x256xf32> to vector<1x254xf32>
    %137 = tpu.concatenate %136, %135 in 1 : vector<1x254xf32>, vector<1x2xf32> -> vector<1x256xf32>
    %138 = vector.extract_strided_slice %114 {offsets = [5, 0], sizes = [1, 256], strides = [1, 1]} : vector<7x256xf32> to vector<1x256xf32>
    %139 = arith.mulf %137, %138 : vector<1x256xf32>
    %cst_19 = arith.constant 0.000000e+00 : f32
    %140 = vector.broadcast %cst_19 : f32 to vector<1x3xf32>
    %141 = vector.extract_strided_slice %15 {offsets = [0, 3], sizes = [1, 253], strides = [1, 1]} : vector<1x256xf32> to vector<1x253xf32>
    %142 = tpu.concatenate %141, %140 in 1 : vector<1x253xf32>, vector<1x3xf32> -> vector<1x256xf32>
    %143 = vector.extract_strided_slice %114 {offsets = [6, 0], sizes = [1, 256], strides = [1, 1]} : vector<7x256xf32> to vector<1x256xf32>
    %144 = arith.mulf %142, %143 : vector<1x256xf32>
    %cst_20 = arith.constant 0.000000e+00 : f32
    %145 = vector.broadcast %cst_20 : f32 to vector<1x3xf32>
    %146 = vector.extract_strided_slice %13 {offsets = [0, 0], sizes = [1, 253], strides = [1, 1]} : vector<1x256xf32> to vector<1x253xf32>
    %147 = tpu.concatenate %145, %146 in 1 : vector<1x3xf32>, vector<1x253xf32> -> vector<1x256xf32>
    %148 = vector.extract_strided_slice %114 {offsets = [0, 0], sizes = [1, 256], strides = [1, 1]} : vector<7x256xf32> to vector<1x256xf32>
    %149 = arith.mulf %147, %148 : vector<1x256xf32>
    %cst_21 = arith.constant 0.000000e+00 : f32
    %150 = vector.broadcast %cst_21 : f32 to vector<1x2xf32>
    %151 = vector.extract_strided_slice %13 {offsets = [0, 0], sizes = [1, 254], strides = [1, 1]} : vector<1x256xf32> to vector<1x254xf32>
    %152 = tpu.concatenate %150, %151 in 1 : vector<1x2xf32>, vector<1x254xf32> -> vector<1x256xf32>
    %153 = vector.extract_strided_slice %114 {offsets = [1, 0], sizes = [1, 256], strides = [1, 1]} : vector<7x256xf32> to vector<1x256xf32>
    %154 = arith.mulf %152, %153 : vector<1x256xf32>
    %cst_22 = arith.constant 0.000000e+00 : f32
    %155 = vector.broadcast %cst_22 : f32 to vector<1x1xf32>
    %156 = vector.extract_strided_slice %13 {offsets = [0, 0], sizes = [1, 255], strides = [1, 1]} : vector<1x256xf32> to vector<1x255xf32>
    %157 = tpu.concatenate %155, %156 in 1 : vector<1x1xf32>, vector<1x255xf32> -> vector<1x256xf32>
    %158 = vector.extract_strided_slice %114 {offsets = [2, 0], sizes = [1, 256], strides = [1, 1]} : vector<7x256xf32> to vector<1x256xf32>
    %159 = arith.mulf %157, %158 : vector<1x256xf32>
    %cst_23 = arith.constant 0.000000e+00 : f32
    %160 = vector.broadcast %cst_23 : f32 to vector<1x1xf32>
    %161 = vector.extract_strided_slice %13 {offsets = [0, 1], sizes = [1, 255], strides = [1, 1]} : vector<1x256xf32> to vector<1x255xf32>
    %162 = tpu.concatenate %161, %160 in 1 : vector<1x255xf32>, vector<1x1xf32> -> vector<1x256xf32>
    %163 = vector.extract_strided_slice %114 {offsets = [4, 0], sizes = [1, 256], strides = [1, 1]} : vector<7x256xf32> to vector<1x256xf32>
    %164 = arith.mulf %162, %163 : vector<1x256xf32>
    %cst_24 = arith.constant 0.000000e+00 : f32
    %165 = vector.broadcast %cst_24 : f32 to vector<1x2xf32>
    %166 = vector.extract_strided_slice %13 {offsets = [0, 2], sizes = [1, 254], strides = [1, 1]} : vector<1x256xf32> to vector<1x254xf32>
    %167 = tpu.concatenate %166, %165 in 1 : vector<1x254xf32>, vector<1x2xf32> -> vector<1x256xf32>
    %168 = vector.extract_strided_slice %114 {offsets = [5, 0], sizes = [1, 256], strides = [1, 1]} : vector<7x256xf32> to vector<1x256xf32>
    %169 = arith.mulf %167, %168 : vector<1x256xf32>
    %cst_25 = arith.constant 0.000000e+00 : f32
    %170 = vector.broadcast %cst_25 : f32 to vector<1x3xf32>
    %171 = vector.extract_strided_slice %13 {offsets = [0, 3], sizes = [1, 253], strides = [1, 1]} : vector<1x256xf32> to vector<1x253xf32>
    %172 = tpu.concatenate %171, %170 in 1 : vector<1x253xf32>, vector<1x3xf32> -> vector<1x256xf32>
    %173 = vector.extract_strided_slice %114 {offsets = [6, 0], sizes = [1, 256], strides = [1, 1]} : vector<7x256xf32> to vector<1x256xf32>
    %174 = arith.mulf %172, %173 : vector<1x256xf32>
    %175 = vector.broadcast %16 : f32 to vector<1x256xf32>
    %176 = arith.mulf %119, %175 : vector<1x256xf32>
    %177 = vector.broadcast %65 : f32 to vector<1x256xf32>
    %178 = arith.mulf %149, %177 : vector<1x256xf32>
    %179 = vector.broadcast %17 : f32 to vector<1x256xf32>
    %180 = arith.mulf %124, %179 : vector<1x256xf32>
    %181 = arith.addf %176, %180 : vector<1x256xf32>
    %182 = vector.broadcast %66 : f32 to vector<1x256xf32>
    %183 = arith.mulf %154, %182 : vector<1x256xf32>
    %184 = arith.addf %178, %183 : vector<1x256xf32>
    %185 = vector.broadcast %18 : f32 to vector<1x256xf32>
    %186 = arith.mulf %129, %185 : vector<1x256xf32>
    %187 = arith.addf %181, %186 : vector<1x256xf32>
    %188 = vector.broadcast %67 : f32 to vector<1x256xf32>
    %189 = arith.mulf %159, %188 : vector<1x256xf32>
    %190 = arith.addf %184, %189 : vector<1x256xf32>
    %191 = vector.broadcast %19 : f32 to vector<1x256xf32>
    %192 = arith.mulf %15, %191 : vector<1x256xf32>
    %193 = arith.addf %187, %192 : vector<1x256xf32>
    %194 = vector.broadcast %68 : f32 to vector<1x256xf32>
    %195 = arith.mulf %13, %194 : vector<1x256xf32>
    %196 = arith.addf %190, %195 : vector<1x256xf32>
    %197 = vector.broadcast %20 : f32 to vector<1x256xf32>
    %198 = arith.mulf %134, %197 : vector<1x256xf32>
    %199 = arith.addf %193, %198 : vector<1x256xf32>
    %200 = vector.broadcast %69 : f32 to vector<1x256xf32>
    %201 = arith.mulf %164, %200 : vector<1x256xf32>
    %202 = arith.addf %196, %201 : vector<1x256xf32>
    %203 = vector.broadcast %21 : f32 to vector<1x256xf32>
    %204 = arith.mulf %139, %203 : vector<1x256xf32>
    %205 = arith.addf %199, %204 : vector<1x256xf32>
    %206 = vector.broadcast %70 : f32 to vector<1x256xf32>
    %207 = arith.mulf %169, %206 : vector<1x256xf32>
    %208 = arith.addf %202, %207 : vector<1x256xf32>
    %209 = vector.broadcast %22 : f32 to vector<1x256xf32>
    %210 = arith.mulf %144, %209 : vector<1x256xf32>
    %211 = arith.addf %205, %210 : vector<1x256xf32>
    %212 = vector.broadcast %71 : f32 to vector<1x256xf32>
    %213 = arith.mulf %174, %212 : vector<1x256xf32>
    %214 = arith.addf %208, %213 : vector<1x256xf32>
    %215 = arith.addf %211, %214 : vector<1x256xf32>
    %cst_26 = arith.constant 0.000000e+00 : f32
    %216 = vector.broadcast %cst_26 : f32 to vector<1x48xf32>
    %217 = vector.extract_strided_slice %215 {offsets = [0, 0], sizes = [1, 208], strides = [1, 1]} : vector<1x256xf32> to vector<1x208xf32>
    %218 = tpu.concatenate %216, %217 in 1 : vector<1x48xf32>, vector<1x208xf32> -> vector<1x256xf32>
    %219 = vector.broadcast %23 : f32 to vector<1x256xf32>
    %220 = arith.mulf %119, %219 : vector<1x256xf32>
    %221 = vector.broadcast %72 : f32 to vector<1x256xf32>
    %222 = arith.mulf %149, %221 : vector<1x256xf32>
    %223 = vector.broadcast %24 : f32 to vector<1x256xf32>
    %224 = arith.mulf %124, %223 : vector<1x256xf32>
    %225 = arith.addf %220, %224 : vector<1x256xf32>
    %226 = vector.broadcast %73 : f32 to vector<1x256xf32>
    %227 = arith.mulf %154, %226 : vector<1x256xf32>
    %228 = arith.addf %222, %227 : vector<1x256xf32>
    %229 = vector.broadcast %25 : f32 to vector<1x256xf32>
    %230 = arith.mulf %129, %229 : vector<1x256xf32>
    %231 = arith.addf %225, %230 : vector<1x256xf32>
    %232 = vector.broadcast %74 : f32 to vector<1x256xf32>
    %233 = arith.mulf %159, %232 : vector<1x256xf32>
    %234 = arith.addf %228, %233 : vector<1x256xf32>
    %235 = vector.broadcast %26 : f32 to vector<1x256xf32>
    %236 = arith.mulf %15, %235 : vector<1x256xf32>
    %237 = arith.addf %231, %236 : vector<1x256xf32>
    %238 = vector.broadcast %75 : f32 to vector<1x256xf32>
    %239 = arith.mulf %13, %238 : vector<1x256xf32>
    %240 = arith.addf %234, %239 : vector<1x256xf32>
    %241 = vector.broadcast %27 : f32 to vector<1x256xf32>
    %242 = arith.mulf %134, %241 : vector<1x256xf32>
    %243 = arith.addf %237, %242 : vector<1x256xf32>
    %244 = vector.broadcast %76 : f32 to vector<1x256xf32>
    %245 = arith.mulf %164, %244 : vector<1x256xf32>
    %246 = arith.addf %240, %245 : vector<1x256xf32>
    %247 = vector.broadcast %28 : f32 to vector<1x256xf32>
    %248 = arith.mulf %139, %247 : vector<1x256xf32>
    %249 = arith.addf %243, %248 : vector<1x256xf32>
    %250 = vector.broadcast %77 : f32 to vector<1x256xf32>
    %251 = arith.mulf %169, %250 : vector<1x256xf32>
    %252 = arith.addf %246, %251 : vector<1x256xf32>
    %253 = vector.broadcast %29 : f32 to vector<1x256xf32>
    %254 = arith.mulf %144, %253 : vector<1x256xf32>
    %255 = arith.addf %249, %254 : vector<1x256xf32>
    %256 = vector.broadcast %78 : f32 to vector<1x256xf32>
    %257 = arith.mulf %174, %256 : vector<1x256xf32>
    %258 = arith.addf %252, %257 : vector<1x256xf32>
    %259 = arith.addf %255, %258 : vector<1x256xf32>
    %cst_27 = arith.constant 0.000000e+00 : f32
    %260 = vector.broadcast %cst_27 : f32 to vector<1x32xf32>
    %261 = vector.extract_strided_slice %259 {offsets = [0, 0], sizes = [1, 224], strides = [1, 1]} : vector<1x256xf32> to vector<1x224xf32>
    %262 = tpu.concatenate %260, %261 in 1 : vector<1x32xf32>, vector<1x224xf32> -> vector<1x256xf32>
    %263 = vector.broadcast %30 : f32 to vector<1x256xf32>
    %264 = arith.mulf %119, %263 : vector<1x256xf32>
    %265 = vector.broadcast %79 : f32 to vector<1x256xf32>
    %266 = arith.mulf %149, %265 : vector<1x256xf32>
    %267 = vector.broadcast %31 : f32 to vector<1x256xf32>
    %268 = arith.mulf %124, %267 : vector<1x256xf32>
    %269 = arith.addf %264, %268 : vector<1x256xf32>
    %270 = vector.broadcast %80 : f32 to vector<1x256xf32>
    %271 = arith.mulf %154, %270 : vector<1x256xf32>
    %272 = arith.addf %266, %271 : vector<1x256xf32>
    %273 = vector.broadcast %32 : f32 to vector<1x256xf32>
    %274 = arith.mulf %129, %273 : vector<1x256xf32>
    %275 = arith.addf %269, %274 : vector<1x256xf32>
    %276 = vector.broadcast %81 : f32 to vector<1x256xf32>
    %277 = arith.mulf %159, %276 : vector<1x256xf32>
    %278 = arith.addf %272, %277 : vector<1x256xf32>
    %279 = vector.broadcast %33 : f32 to vector<1x256xf32>
    %280 = arith.mulf %15, %279 : vector<1x256xf32>
    %281 = arith.addf %275, %280 : vector<1x256xf32>
    %282 = vector.broadcast %82 : f32 to vector<1x256xf32>
    %283 = arith.mulf %13, %282 : vector<1x256xf32>
    %284 = arith.addf %278, %283 : vector<1x256xf32>
    %285 = vector.broadcast %34 : f32 to vector<1x256xf32>
    %286 = arith.mulf %134, %285 : vector<1x256xf32>
    %287 = arith.addf %281, %286 : vector<1x256xf32>
    %288 = vector.broadcast %83 : f32 to vector<1x256xf32>
    %289 = arith.mulf %164, %288 : vector<1x256xf32>
    %290 = arith.addf %284, %289 : vector<1x256xf32>
    %291 = vector.broadcast %35 : f32 to vector<1x256xf32>
    %292 = arith.mulf %139, %291 : vector<1x256xf32>
    %293 = arith.addf %287, %292 : vector<1x256xf32>
    %294 = vector.broadcast %84 : f32 to vector<1x256xf32>
    %295 = arith.mulf %169, %294 : vector<1x256xf32>
    %296 = arith.addf %290, %295 : vector<1x256xf32>
    %297 = vector.broadcast %36 : f32 to vector<1x256xf32>
    %298 = arith.mulf %144, %297 : vector<1x256xf32>
    %299 = arith.addf %293, %298 : vector<1x256xf32>
    %300 = vector.broadcast %85 : f32 to vector<1x256xf32>
    %301 = arith.mulf %174, %300 : vector<1x256xf32>
    %302 = arith.addf %296, %301 : vector<1x256xf32>
    %303 = arith.addf %299, %302 : vector<1x256xf32>
    %cst_28 = arith.constant 0.000000e+00 : f32
    %304 = vector.broadcast %cst_28 : f32 to vector<1x16xf32>
    %305 = vector.extract_strided_slice %303 {offsets = [0, 0], sizes = [1, 240], strides = [1, 1]} : vector<1x256xf32> to vector<1x240xf32>
    %306 = tpu.concatenate %304, %305 in 1 : vector<1x16xf32>, vector<1x240xf32> -> vector<1x256xf32>
    %307 = vector.broadcast %37 : f32 to vector<1x256xf32>
    %308 = arith.mulf %119, %307 : vector<1x256xf32>
    %309 = vector.broadcast %86 : f32 to vector<1x256xf32>
    %310 = arith.mulf %149, %309 : vector<1x256xf32>
    %311 = vector.broadcast %38 : f32 to vector<1x256xf32>
    %312 = arith.mulf %124, %311 : vector<1x256xf32>
    %313 = arith.addf %308, %312 : vector<1x256xf32>
    %314 = vector.broadcast %87 : f32 to vector<1x256xf32>
    %315 = arith.mulf %154, %314 : vector<1x256xf32>
    %316 = arith.addf %310, %315 : vector<1x256xf32>
    %317 = vector.broadcast %39 : f32 to vector<1x256xf32>
    %318 = arith.mulf %129, %317 : vector<1x256xf32>
    %319 = arith.addf %313, %318 : vector<1x256xf32>
    %320 = vector.broadcast %88 : f32 to vector<1x256xf32>
    %321 = arith.mulf %159, %320 : vector<1x256xf32>
    %322 = arith.addf %316, %321 : vector<1x256xf32>
    %323 = vector.broadcast %40 : f32 to vector<1x256xf32>
    %324 = arith.mulf %15, %323 : vector<1x256xf32>
    %325 = arith.addf %319, %324 : vector<1x256xf32>
    %326 = vector.broadcast %89 : f32 to vector<1x256xf32>
    %327 = arith.mulf %13, %326 : vector<1x256xf32>
    %328 = arith.addf %322, %327 : vector<1x256xf32>
    %329 = vector.broadcast %41 : f32 to vector<1x256xf32>
    %330 = arith.mulf %134, %329 : vector<1x256xf32>
    %331 = arith.addf %325, %330 : vector<1x256xf32>
    %332 = vector.broadcast %90 : f32 to vector<1x256xf32>
    %333 = arith.mulf %164, %332 : vector<1x256xf32>
    %334 = arith.addf %328, %333 : vector<1x256xf32>
    %335 = vector.broadcast %42 : f32 to vector<1x256xf32>
    %336 = arith.mulf %139, %335 : vector<1x256xf32>
    %337 = arith.addf %331, %336 : vector<1x256xf32>
    %338 = vector.broadcast %91 : f32 to vector<1x256xf32>
    %339 = arith.mulf %169, %338 : vector<1x256xf32>
    %340 = arith.addf %334, %339 : vector<1x256xf32>
    %341 = vector.broadcast %43 : f32 to vector<1x256xf32>
    %342 = arith.mulf %144, %341 : vector<1x256xf32>
    %343 = arith.addf %337, %342 : vector<1x256xf32>
    %344 = vector.broadcast %92 : f32 to vector<1x256xf32>
    %345 = arith.mulf %174, %344 : vector<1x256xf32>
    %346 = arith.addf %340, %345 : vector<1x256xf32>
    %347 = arith.addf %343, %346 : vector<1x256xf32>
    %348 = vector.broadcast %44 : f32 to vector<1x256xf32>
    %349 = arith.mulf %119, %348 : vector<1x256xf32>
    %350 = vector.broadcast %93 : f32 to vector<1x256xf32>
    %351 = arith.mulf %149, %350 : vector<1x256xf32>
    %352 = vector.broadcast %45 : f32 to vector<1x256xf32>
    %353 = arith.mulf %124, %352 : vector<1x256xf32>
    %354 = arith.addf %349, %353 : vector<1x256xf32>
    %355 = vector.broadcast %94 : f32 to vector<1x256xf32>
    %356 = arith.mulf %154, %355 : vector<1x256xf32>
    %357 = arith.addf %351, %356 : vector<1x256xf32>
    %358 = vector.broadcast %46 : f32 to vector<1x256xf32>
    %359 = arith.mulf %129, %358 : vector<1x256xf32>
    %360 = arith.addf %354, %359 : vector<1x256xf32>
    %361 = vector.broadcast %95 : f32 to vector<1x256xf32>
    %362 = arith.mulf %159, %361 : vector<1x256xf32>
    %363 = arith.addf %357, %362 : vector<1x256xf32>
    %364 = vector.broadcast %47 : f32 to vector<1x256xf32>
    %365 = arith.mulf %15, %364 : vector<1x256xf32>
    %366 = arith.addf %360, %365 : vector<1x256xf32>
    %367 = vector.broadcast %96 : f32 to vector<1x256xf32>
    %368 = arith.mulf %13, %367 : vector<1x256xf32>
    %369 = arith.addf %363, %368 : vector<1x256xf32>
    %370 = vector.broadcast %48 : f32 to vector<1x256xf32>
    %371 = arith.mulf %134, %370 : vector<1x256xf32>
    %372 = arith.addf %366, %371 : vector<1x256xf32>
    %373 = vector.broadcast %97 : f32 to vector<1x256xf32>
    %374 = arith.mulf %164, %373 : vector<1x256xf32>
    %375 = arith.addf %369, %374 : vector<1x256xf32>
    %376 = vector.broadcast %49 : f32 to vector<1x256xf32>
    %377 = arith.mulf %139, %376 : vector<1x256xf32>
    %378 = arith.addf %372, %377 : vector<1x256xf32>
    %379 = vector.broadcast %98 : f32 to vector<1x256xf32>
    %380 = arith.mulf %169, %379 : vector<1x256xf32>
    %381 = arith.addf %375, %380 : vector<1x256xf32>
    %382 = vector.broadcast %50 : f32 to vector<1x256xf32>
    %383 = arith.mulf %144, %382 : vector<1x256xf32>
    %384 = arith.addf %378, %383 : vector<1x256xf32>
    %385 = vector.broadcast %99 : f32 to vector<1x256xf32>
    %386 = arith.mulf %174, %385 : vector<1x256xf32>
    %387 = arith.addf %381, %386 : vector<1x256xf32>
    %388 = arith.addf %384, %387 : vector<1x256xf32>
    %cst_29 = arith.constant 0.000000e+00 : f32
    %389 = vector.broadcast %cst_29 : f32 to vector<1x16xf32>
    %390 = vector.extract_strided_slice %388 {offsets = [0, 16], sizes = [1, 240], strides = [1, 1]} : vector<1x256xf32> to vector<1x240xf32>
    %391 = tpu.concatenate %390, %389 in 1 : vector<1x240xf32>, vector<1x16xf32> -> vector<1x256xf32>
    %392 = vector.broadcast %51 : f32 to vector<1x256xf32>
    %393 = arith.mulf %119, %392 : vector<1x256xf32>
    %394 = vector.broadcast %100 : f32 to vector<1x256xf32>
    %395 = arith.mulf %149, %394 : vector<1x256xf32>
    %396 = vector.broadcast %52 : f32 to vector<1x256xf32>
    %397 = arith.mulf %124, %396 : vector<1x256xf32>
    %398 = arith.addf %393, %397 : vector<1x256xf32>
    %399 = vector.broadcast %101 : f32 to vector<1x256xf32>
    %400 = arith.mulf %154, %399 : vector<1x256xf32>
    %401 = arith.addf %395, %400 : vector<1x256xf32>
    %402 = vector.broadcast %53 : f32 to vector<1x256xf32>
    %403 = arith.mulf %129, %402 : vector<1x256xf32>
    %404 = arith.addf %398, %403 : vector<1x256xf32>
    %405 = vector.broadcast %102 : f32 to vector<1x256xf32>
    %406 = arith.mulf %159, %405 : vector<1x256xf32>
    %407 = arith.addf %401, %406 : vector<1x256xf32>
    %408 = vector.broadcast %54 : f32 to vector<1x256xf32>
    %409 = arith.mulf %15, %408 : vector<1x256xf32>
    %410 = arith.addf %404, %409 : vector<1x256xf32>
    %411 = vector.broadcast %103 : f32 to vector<1x256xf32>
    %412 = arith.mulf %13, %411 : vector<1x256xf32>
    %413 = arith.addf %407, %412 : vector<1x256xf32>
    %414 = vector.broadcast %55 : f32 to vector<1x256xf32>
    %415 = arith.mulf %134, %414 : vector<1x256xf32>
    %416 = arith.addf %410, %415 : vector<1x256xf32>
    %417 = vector.broadcast %104 : f32 to vector<1x256xf32>
    %418 = arith.mulf %164, %417 : vector<1x256xf32>
    %419 = arith.addf %413, %418 : vector<1x256xf32>
    %420 = vector.broadcast %56 : f32 to vector<1x256xf32>
    %421 = arith.mulf %139, %420 : vector<1x256xf32>
    %422 = arith.addf %416, %421 : vector<1x256xf32>
    %423 = vector.broadcast %105 : f32 to vector<1x256xf32>
    %424 = arith.mulf %169, %423 : vector<1x256xf32>
    %425 = arith.addf %419, %424 : vector<1x256xf32>
    %426 = vector.broadcast %57 : f32 to vector<1x256xf32>
    %427 = arith.mulf %144, %426 : vector<1x256xf32>
    %428 = arith.addf %422, %427 : vector<1x256xf32>
    %429 = vector.broadcast %106 : f32 to vector<1x256xf32>
    %430 = arith.mulf %174, %429 : vector<1x256xf32>
    %431 = arith.addf %425, %430 : vector<1x256xf32>
    %432 = arith.addf %428, %431 : vector<1x256xf32>
    %cst_30 = arith.constant 0.000000e+00 : f32
    %433 = vector.broadcast %cst_30 : f32 to vector<1x32xf32>
    %434 = vector.extract_strided_slice %432 {offsets = [0, 32], sizes = [1, 224], strides = [1, 1]} : vector<1x256xf32> to vector<1x224xf32>
    %435 = tpu.concatenate %434, %433 in 1 : vector<1x224xf32>, vector<1x32xf32> -> vector<1x256xf32>
    %436 = vector.broadcast %58 : f32 to vector<1x256xf32>
    %437 = arith.mulf %119, %436 : vector<1x256xf32>
    %438 = vector.broadcast %107 : f32 to vector<1x256xf32>
    %439 = arith.mulf %149, %438 : vector<1x256xf32>
    %440 = vector.broadcast %59 : f32 to vector<1x256xf32>
    %441 = arith.mulf %124, %440 : vector<1x256xf32>
    %442 = arith.addf %437, %441 : vector<1x256xf32>
    %443 = vector.broadcast %108 : f32 to vector<1x256xf32>
    %444 = arith.mulf %154, %443 : vector<1x256xf32>
    %445 = arith.addf %439, %444 : vector<1x256xf32>
    %446 = vector.broadcast %60 : f32 to vector<1x256xf32>
    %447 = arith.mulf %129, %446 : vector<1x256xf32>
    %448 = arith.addf %442, %447 : vector<1x256xf32>
    %449 = vector.broadcast %109 : f32 to vector<1x256xf32>
    %450 = arith.mulf %159, %449 : vector<1x256xf32>
    %451 = arith.addf %445, %450 : vector<1x256xf32>
    %452 = vector.broadcast %61 : f32 to vector<1x256xf32>
    %453 = arith.mulf %15, %452 : vector<1x256xf32>
    %454 = arith.addf %448, %453 : vector<1x256xf32>
    %455 = vector.broadcast %110 : f32 to vector<1x256xf32>
    %456 = arith.mulf %13, %455 : vector<1x256xf32>
    %457 = arith.addf %451, %456 : vector<1x256xf32>
    %458 = vector.broadcast %62 : f32 to vector<1x256xf32>
    %459 = arith.mulf %134, %458 : vector<1x256xf32>
    %460 = arith.addf %454, %459 : vector<1x256xf32>
    %461 = vector.broadcast %111 : f32 to vector<1x256xf32>
    %462 = arith.mulf %164, %461 : vector<1x256xf32>
    %463 = arith.addf %457, %462 : vector<1x256xf32>
    %464 = vector.broadcast %63 : f32 to vector<1x256xf32>
    %465 = arith.mulf %139, %464 : vector<1x256xf32>
    %466 = arith.addf %460, %465 : vector<1x256xf32>
    %467 = vector.broadcast %112 : f32 to vector<1x256xf32>
    %468 = arith.mulf %169, %467 : vector<1x256xf32>
    %469 = arith.addf %463, %468 : vector<1x256xf32>
    %470 = vector.broadcast %64 : f32 to vector<1x256xf32>
    %471 = arith.mulf %144, %470 : vector<1x256xf32>
    %472 = arith.addf %466, %471 : vector<1x256xf32>
    %473 = vector.broadcast %113 : f32 to vector<1x256xf32>
    %474 = arith.mulf %174, %473 : vector<1x256xf32>
    %475 = arith.addf %469, %474 : vector<1x256xf32>
    %476 = arith.addf %472, %475 : vector<1x256xf32>
    %cst_31 = arith.constant 0.000000e+00 : f32
    %477 = vector.broadcast %cst_31 : f32 to vector<1x48xf32>
    %478 = vector.extract_strided_slice %476 {offsets = [0, 48], sizes = [1, 208], strides = [1, 1]} : vector<1x256xf32> to vector<1x208xf32>
    %479 = tpu.concatenate %478, %477 in 1 : vector<1x208xf32>, vector<1x48xf32> -> vector<1x256xf32>
    %480 = arith.addf %218, %262 : vector<1x256xf32>
    %481 = arith.addf %306, %347 : vector<1x256xf32>
    %482 = arith.addf %391, %435 : vector<1x256xf32>
    %483 = arith.addf %480, %481 : vector<1x256xf32>
    %484 = arith.addf %482, %479 : vector<1x256xf32>
    %485 = arith.addf %483, %484 : vector<1x256xf32>
    %c0_32 = arith.constant 0 : index
    %486 = memref.load %arg3[%c0_32] : memref<1xf32, #tpu.memory_space<smem>>
    %487 = vector.broadcast %486 : f32 to vector<1x256xf32>
    %488 = arith.addf %485, %487 : vector<1x256xf32>
    %489 = arith.negf %488 : vector<1x256xf32>
    %490 = math.exp %489 : vector<1x256xf32>
    %cst_33 = arith.constant 1.000000e+00 : f32
    %491 = vector.broadcast %cst_33 : f32 to vector<1x256xf32>
    %492 = arith.addf %491, %490 : vector<1x256xf32>
    %493 = arith.divf %491, %492 : vector<1x256xf32>
    %c0_34 = arith.constant 0 : index
    %c0_35 = arith.constant 0 : index
    %c0_36 = arith.constant 0 : index
    %494 = vector.load %arg5[%c0_34, %c0_35, %c0_36] : memref<1x1x256xf32, #tpu.memory_space<vmem>>, vector<1x1x256xf32>
    %495 = vector.shape_cast %494 : vector<1x1x256xf32> to vector<1x256xf32>
    %496 = vector.shape_cast %493 : vector<1x256xf32> to vector<1x1x256xf32>
    tpu.vector_store %arg5[%c0_34, %c0_35, %c0_36], %496 {strides = array<i32>} : memref<1x1x256xf32, #tpu.memory_space<vmem>>, vector<1x1x256xf32>,
    return
  }
  func.func @transform_0(%arg0: i32) -> (i32, i32, i32) {
    %c0_i32 = arith.constant 0 : i32
    %c0_i32_0 = arith.constant 0 : i32
    %c0_i32_1 = arith.constant 0 : i32
    return %arg0, %c0_i32, %c0_i32_0 : i32, i32, i32
  }
  func.func @transform_1(%arg0: i32) -> i32 {
    %c0_i32 = arith.constant 0 : i32
    %c0_i32_0 = arith.constant 0 : i32
    return %c0_i32 : i32
  }
  func.func @transform_2(%arg0: i32) -> i32 {
    %c0_i32 = arith.constant 0 : i32
    %c0_i32_0 = arith.constant 0 : i32
    return %c0_i32 : i32
  }
  func.func @transform_3(%arg0: i32) -> (i32, i32) {
    %c0_i32 = arith.constant 0 : i32
    %c0_i32_0 = arith.constant 0 : i32
    %c0_i32_1 = arith.constant 0 : i32
    return %c0_i32, %c0_i32_0 : i32, i32
  }
  func.func @transform_4(%arg0: i32) -> (i32, i32, i32) {
    %c0_i32 = arith.constant 0 : i32
    %c0_i32_0 = arith.constant 0 : i32
    %c0_i32_1 = arith.constant 0 : i32
    return %arg0, %c0_i32, %c0_i32_0 : i32, i32, i32
  }
}

</mosaic_0001>

<bundles_post_ra>
// kernel: tpu_custom_call.1
= control target key start
LH: loop header
LB: loop body
LE: loop exit
PB: predicated region body
PF: predicated region fallthrough
CT: control target
= control target key end

     0   :  { %s2873_s0 = inlined_call_operand.hbm [shape: f32[2,4,256], index: 0, kind: input, shape index: {}]   ;;  %s2874_s1 = inlined_call_operand.vmem [shape: f32[98], index: 1, kind: input, shape index: {}]   ;;  %s2875_s2 = inlined_call_operand.<no memory space> [shape: f32[1], index: 2, kind: input, shape index: {}]   ;;  %s2876_s3 = inlined_call_operand.hbm [shape: f32[7,256], index: 3, kind: input, shape index: {}]   ;;  %s2877_s4 = inlined_call_operand.hbm [shape: f32[2,1,256], index: 4, kind: output, shape index: {}]  }
   0x1   :  { %2942 = sst [smem:[#allocation44_spill]] %s2873_s0 }
   0x2   :  { %2943 = sst [smem:[#allocation45_spill]] %s2874_s1 }
   0x3   :  { %2944 = sst [smem:[#allocation46_spill]] %s2876_s3 }
   0x4   :  { %2945 = sst [smem:[#allocation47_spill]] %s2877_s4 }
   0x5   :  { %9 = sst [smem:[#allocation2]] %s2875_s2 }
   0x6   :  { %10 = vsyncpa [#allocation4], 0 }
   0x7   :  { %12 = vsyncpa [#allocation4 + $0x1], 0 }
   0x8   :  { %13 = vsyncpa [#allocation6], 0 }
   0x9   :  { %14 = vsyncpa [#allocation9], 0 }
   0xa   :  { %15 = vsyncpa [#allocation5], 0 }
   0xb   :  { %17 = vsyncpa [#allocation5 + $0x1], 0  ;;  %s1685_s17 = smov 0   ;;  %s1687_s18 = smov 0  }
   0xc   :  { %s1689_s19 = smov 0   ;;  %s1691_s20 = smov 0  }
   0xd LB: > { %2946 = sst [smem:[#allocation15_spill]] %s1629_s17  ;;  %s1706_s2 = sadd.s32 4294967295, %s1641_s20   ;;  %s1641_s20 = sphi %s1691_s20, %s3110_s20   ;;  %s1637_s19 = sphi %s1689_s19, %s3113_s19   ;;  %s1633_s18 = sphi %s1687_s18, %s3112_s18   ;;  %s1629_s17 = sphi %s1685_s17, %s3111_s17  }
   0xe   : > { %2947 = sst [smem:[#allocation16_spill]] %s1633_s18  ;;  %s1285_s21 = sadd.s32 4294967294, %s1641_s20  }
   0xf   : > { %2948 = sst [smem:[#allocation17_spill]] %s1637_s19  ;;  %p43_p0 = scmp.ne.s32.totalorder %s1633_s18, %s1629_s17 }
  0x10   : > { %2949 = sst [smem:[#allocation18_spill]] %s1641_s20  ;;  %p44_p1 = scmp.eq.s32.totalorder %s1706_s2, 0 }
  0x11   : > { %2950 = sst [smem:[#allocation19_spill]] %s1706_s2  ;;  %p130_p2 = scmp.eq.s32.totalorder %s1706_s2, 1 }
  0x12   : > { %p136_p3 = scmp.eq.s32.totalorder %s1285_s21, 1  ;;  %p1715_p4 = por %p44_p1, %p43_p0 }
  0x13   : > { %p1286_p5 = scmp.ge.s32.totalorder %s1641_s20, 1  ;;  %p143_p7 = scmp.lt.s32.totalorder %s1641_s20, 3 }
  0x14   : > { %p1720_p6 = por %p136_p3, %p43_p0  ;;  %s2954_s1 = sld [smem:[#allocation45_spill]] }
  0x15   : > { %p1728_p8 = pnand %p1286_p5, %p143_p7  ;;  %s2956_s3 = sld [smem:[#allocation46_spill]] }
  0x16   : > { %s2952_s23 = scalar_select %p1720_p6, 1, 0 }
  0x17   : > { %p1417_p10 = pneg %p1728_p8  ;;  %s1643_s5 = smov [#allocation8]  }
  0x18   : > { %2953 = sst [smem:[#allocation20_spill]] %s2952_s23  ;;  %s170_s6 = sshll.u32 %s1643_s5, 4  ;;  %s171_s6 = int_to_ptr.vmem [resolvable:$true] %s170_s6 }
  0x19   : > { %p1418_p11 = pnand %p1417_p10, %p44_p1  ;;  %s1644_s7 = smov [#allocation7]  }
  0x1a   : > { %s155_s26 = sshll.u32 %s2954_s1, 4  ;;  %s1741_s8 = sadd.s32 1, %s1641_s20   ;;  %s156_s26 = int_to_ptr.vmem [resolvable:$true] %s155_s26 }
  0x1b   : > { %s168_s30 = sshll.u32 %s2956_s3, 4  ;;  %2957 = sst [smem:[#allocation21_spill]] %s1741_s8  ;;  %s169_s30 = int_to_ptr.hbm [resolvable:$true] %s168_s30 }
  0x1c   : > { %1420 = dma.vmem_to_smem (!%p1418_p11), %s156_s26, 16, %s1644_s7, [#allocation6]  }
  0x1d   : > { %1423 = dma.hbm_to_vmem [thread:$0]  (!%p1418_p11), %s169_s30, 256, %s171_s6, [#allocation9]  }
  0x1e   : > { %s30_s9 = sadd.s32 1, %s1637_s19  ;;  %s27_s10 = ssub.s32 %s1641_s20, %s1741_s8 }
  0x1f   : > { %p37_p12 = scmp.ne.s32.totalorder %s1637_s19, %s1633_s18  ;;  %p28_p13 = scmp.eq.s32.totalorder %s27_s10, 0 }
  0x20   : > { %p38_p0 = scmp.eq.s32.totalorder %s1641_s20, 0  ;;  %p1434_p5 = scmp.lt.s32.totalorder %s1641_s20, 2 }
  0x21   : > { %p1751_p3 = por %p130_p2, %p37_p12  ;;  %s181_s13 = sand.u32 1, %s1637_s19  }
  0x22   : > { %s1757_s12 = scalar_select %p28_p13, %s1637_s19, %s30_s9  }
  0x23   : > { %s2958_s11 = scalar_select %p1751_p3, 1, 0 }
  0x24   : > { %2960 = sst [smem:[#allocation23_spill]] %s1757_s12  ;;  %p39_p7 = por %p38_p0, %p37_p12 }
  0x25   : > { %2959 = sst [smem:[#allocation22_spill]] %s2958_s11  ;;  %s1290_s14 = sshll.u32 %s181_s13, 3 }
  0x26   : > { %s1404_s15 = sshll.u32 %s1641_s20, 3  ;;  %s2961_s0 = sld [smem:[#allocation44_spill]] }
  0x27   : > { %s185_s25 = scalar_lea.vmem [#allocation3], %s1290_s14  ;;  %p1764_p2 = pnand %p1434_p5, %p39_p7 }
  0x28   : > { %s194_s26 = sshll.u32 %s185_s25, 4  ;;  %s182_s30 = scalar_lea.sflag [#allocation4], %s181_s13  ;;  %s195_s26 = int_to_ptr.vmem [resolvable:$true] %s194_s26 }
  0x29   : > { %p1541_p11 = pneg %p1764_p2 }
  0x2c   : > { %s190_s24 = scalar_lea.hbm %s2961_s0, %s1404_s15  ;;  %s1544_s10 = scalar_lea.hbm %s2961_s0, 16 }
  0x2d   : > { %s192_s28 = sshll.u32 %s190_s24, 4  ;;  %s193_s28 = int_to_ptr.hbm [resolvable:$true] %s192_s28 }
  0x2e   : > { %s1537_s5 = sshra.s32 %s193_s28, 4  ;;  %s1538_s5 = int_to_ptr.hbm [resolvable:$true] %s1537_s5 }
  0x2f   : > { %s1539_s6 = scalar_lea.hbm %s1538_s5, 8  ;;  %p1545_p0 = scmp.lt.s32.totalorder %s1538_s5, %s2961_s0 }
  0x30   : > { %p1540_p10 = scmp.ne.s32.totalorder %s1538_s5, %s1539_s6  ;;  %p1546_p5 = scmp.lt.s32.totalorder %s1544_s10, %s1539_s6 }
  0x32   : > { %p1542_p12 = pnand %p1541_p11, %p1540_p10  ;;  %p1547_p7 = por %p1546_p5, %p1545_p0 }
  0x34   : > { %p1543_p13 = pneg %p1542_p12 }
  0x36   : > { %p1548_p9 = pnand %p1547_p7, %p1543_p13 }
  0x38   : > { %1551 = shalt.err (!%p1548_p9)
}
  0x39   : > { %1427 = dma.hbm_to_vmem [thread:$0]  (!%p1764_p2), %s193_s28, 128, %s195_s26, %s182_s30  }
  0x3a   : > { %203 = sbr.rel (%p1728_p8) target bundleno = 485 (0x1e5), region = 36 }
  0x3f   : > { %s1781_s13 = sand.u32 1, %s1633_s18  }
  0x40   : > { %2963 = sst [smem:[#allocation24_spill]] %s1781_s13  ;;  %s1294_s16 = sshll.u32 %s1781_s13, 3 }
  0x41   : > { %s206_s21 = scalar_lea.sflag [#allocation4], %s1781_s13  ;;  %s209_s24 = scalar_lea.vmem [#allocation3], %s1294_s16 }
  0x42   : > { %1612 = dma.done.wait (%p1715_p4), %s206_s21, 128  }
  0x43   : > { %1614 = vsyncadd (%p1715_p4), %s206_s21, 4294967168 }
  0x44   : > { %1616 = dma.done.wait (%p44_p1), [#allocation6], 16  }
  0x45   : > { %1618 = vsyncadd (%p44_p1), [#allocation6], 4294967280 }
  0x46   : > { %1620 = dma.done.wait (%p44_p1), [#allocation9], 256  }
  0x47   : > { %1622 = vsyncadd (%p44_p1), [#allocation9], 4294967040 }
  0x48   : > { %225 = sfence }
  0x49   : > { %v246_v0 = vld [vmem:[%s209_s24] ss:$4 sm:$0x3]  ;;  %v1298_v1 = vld [vmem:[%s209_s24 + $0x1] ss:$4 sm:$0x3] }
  0x4a   : > { %v249_v2 = vadd.f32 %v1298_v1, %v246_v0  ;;  %v1299_v3 = vld [vmem:[%s209_s24 + $0x2] ss:$4 sm:$0x3]  ;;  %v250_v4 = vmax.f32 %v246_v0, %v1298_v1  ;;  %v1300_v5 = vld [vmem:[%s209_s24 + $0x3] ss:$4 sm:$0x3] }
  0x4b   : > { %s1645_s22 = smov 3   ;;  %s1646_s27 = smov 2   ;;  %vm367_vm0 = vcmask 23552   ;;  %v1849_v16 = vld [vmem:[#allocation8] sm:$0x7f]  ;;  %vm395_vm1 = vcmask 7168  }
  0x4c   : > { %v253_v6 = vadd.f32 %v1299_v3, %v249_v2  ;;  %v254_v7 = vmax.f32 %v250_v4, %v1299_v3  ;;  %s1647_s25 = smov 1   ;;  %s1648_s26 = smov 127   ;;  %v1860_v21 = vld [vmem:[#allocation8 + $0x8] sm:$0x7f]  ;;  %v2905_v22 = vrot.slane %v1849_v16, 1  ;;  %v2902_v24 = vrot.slane %v1849_v16, 2 }
  0x4d   : > { %s1649_s28 = smov 126   ;;  %s1650_s29 = smov 125   ;;  %v386_v25 = vrot.slane %v1860_v21, 1  ;;  %vm378_vm2 = vcmask 15360   ;;  %vm425_vm3 = vcmask 1031168   ;;  %vm440_vm4 = vcmask 1022976  }
  0x4e   : > { %v257_v8 = vadd.f32 %v1300_v5, %v253_v6  ;;  %v1797_v9 = vmax.f32 %v254_v7, %v1300_v5  ;;  %s1805_s30 = sld [smem:[#allocation7]]  ;;  %vm410_vm5 = vcmask 1039360   ;;  %vm770_vm6 = vcmask 130048  }
  0x4f   : > { %s1807_s5 = sld [smem:[#allocation7 + $0x1]]  ;;  %vm683_vm7 = vcmask 261120   ;;  %vm596_vm8 = vcmask 392192   ;;  %vm1020_vm9 = vcmask 785408   ;;  %vm933_vm10 = vcmask 916480  }
  0x50   : > { %v1799_v10 = vmul.f32 0.25, %v257_v8  ;;  %v452_v11 = vperm.slane %v1797_v9, 0  ;;  %v453_v14 = vperm.slane %v1797_v9, 1  ;;  %s1809_s6 = sld [smem:[#allocation7 + $0x2]]  ;;  %vm1107_vm11 = vcmask 654336  }
  0x51   : > { %s1811_s7 = sld [smem:[#allocation7 + $0x3]] }
  0x52   : > { %2964 = vst [vmem:[#allocation25_spill] sm:$0xff] %v1799_v10  ;;  %v361_v12 = vperm.slane %v1799_v10, 0  ;;  %454 = vrot.lane.b32.xlu2 %v452_v11, %s1645_s22  ;;  %v362_v13 = vperm.slane %v1799_v10, 1  ;;  %s1813_s9 = sld [smem:[#allocation7 + $0x31]] }
  0x53   : > { %s1815_s10 = sld [smem:[#allocation7 + $0x32]] }
  0x54   : > { %374 = vrot.lane.b32.xlu1 %v361_v12, %s1646_s27  ;;  %363 = vrot.lane.b32.xlu0 %v361_v12, %s1645_s22  ;;  %s1817_s14 = sld [smem:[#allocation7 + $0x7]]  ;;  %v514_v26 = vstv %s1805_s30 }
  0x55   : > { %s1819_s15 = sld [smem:[#allocation7 + $0x8]]  ;;  %v520_v32 = vstv %s1807_s5 }
  0x56   : > { %s1821_s16 = sld [smem:[#allocation7 + $0x9]]  ;;  %v2901_v36 = vstv %s1809_s6 }
  0x57   : > { %s1823_s21 = sld [smem:[#allocation7 + $0xa]]  ;;  %v540_v19 = vstv %s1811_s7 }
  0x58   : > { %s1825_s24 = sld [smem:[#allocation7 + $0x38]]  ;;  %v517_v27 = vstv %s1813_s9  ;;  %v1877_v30 = vmul.f32 %v540_v19, %v1799_v10 }
  0x59   : > { %s1839_s0 = sld [smem:[#allocation7 + $0x11]] }
  0x5a   : > { %456 = vrot.lane.b32.xlu2 %v453_v14, %s1645_s22  ;;  %s1841_s1 = sld [smem:[#allocation7 + $0xf]]  ;;  %v601_v33 = vstv %s1817_s14  ;;  %v543_v48 = vperm.slane %v1877_v30, 0 }
  0x5b   : > { %s1843_s3 = sld [smem:[#allocation7 + $0x10]]  ;;  %v607_v37 = vstv %s1819_s15 }
  0x5c   : > { %376 = vrot.lane.b32.xlu1 %v362_v13, %s1646_s27  ;;  %365 = vrot.lane.b32.xlu0 %v362_v13, %s1645_s22  ;;  %s1827_s22 = sld [smem:[#allocation7 + $0x39]]  ;;  %v2894_v41 = vstv %s1821_s16 }
  0x5d   : > { %s1845_s12 = sld [smem:[#allocation7 + $0x3f]]  ;;  %v627_v20 = vstv %s1823_s21 }
  0x5e   : > { %s1847_s19 = sld [smem:[#allocation7 + $0x40]]  ;;  %v1880_v31 = vmul.f32 %v627_v20, %v1799_v10  ;;  %v604_v34 = vstv %s1825_s24 }
  0x5f   : > { %s1851_s18 = sld [smem:[#allocation7 + $0x23]]  ;;  %v714_v23 = vstv %s1839_s0 }
  0x60   : > { %s1853_s8 = sld [smem:[#allocation7 + $0x24]]  ;;  %v1890_v35 = vmul.f32 %v714_v23, %v1799_v10  ;;  %v694_v42 = vstv %s1841_s1  ;;  %v630_v46 = vperm.slane %v1880_v31, 0 }
  0x61   : > { %s1858_s20 = sld [smem:[#allocation7 + $0x25]]  ;;  %v2898_v43 = vstv %s1843_s3 }
  0x62   : > { %391 = vrot.lane.b32.xlu2 %v361_v12, %s1647_s25  ;;  %s1864_s23 = sld [smem:[#allocation7 + $0x54]]  ;;  %v717_v51 = vperm.slane %v1890_v35, 0 }
  0x63   : > { %s1870_s7 = sld [smem:[#allocation7 + $0x26]]  ;;  %v691_v39 = vstv %s1845_s12 }
  0x64   : > { %466 = vrot.lane.b32.xlu1 %v453_v14, %s1646_s27  ;;  %464 = vrot.lane.b32.xlu0 %v452_v11, %s1646_s27  ;;  %s1829_s27 = sld [smem:[#allocation7 + $0xe]] }
  0x65   : > { %s1882_s0 = sld [smem:[#allocation7 + $0x4d]]  ;;  %v2916_v52 = vstv %s1851_s18 }
  0x66   : > { %s1887_s9 = sld [smem:[#allocation7 + $0x42]]  ;;  %v2919_v55 = vstv %s1853_s8 }
  0x67   : > { %2965 = sst [smem:[#allocation26_spill]] %s1858_s20 }
  0x68   : > { %2966 = sst [smem:[#allocation27_spill]] %s1864_s23  ;;  %v2889_v54 = vstv %s1864_s23 }
  0x69   : > { %s1896_s21 = sld [smem:[#allocation7 + $0x1c]]  ;;  %v964_v60 = vstv %s1870_s7 }
  0x6a   : > { %476 = vrot.lane.b32.xlu2 %v453_v14, %s1647_s25  ;;  %v688_v38 = vstv %s1829_s27  ;;  %s1904_s24 = sld [smem:[#allocation7 + $0x1d]]  ;;  %v1971_v7 = vmul.f32 %v964_v60, %v1799_v10 }
  0x6b   : > { %2968 = sst [smem:[#allocation29_spill]] %s1882_s0  ;;  %v2892_v0 = vstv %s1882_s0 }
  0x6c   : > { %474 = vrot.lane.b32.xlu1 %v452_v11, %s1647_s25  ;;  %393 = vrot.lane.b32.xlu0 %v362_v13, %s1647_s25  ;;  %s1831_s25 = sld [smem:[#allocation7 + $0x33]] }
  0x6d   : > { %s1916_s12 = sld [smem:[#allocation7 + $0x41]] }
  0x6e   : > { %s1924_s17 = sld [smem:[#allocation7 + $0x55]] }
  0x6f   : > { %2969 = sst [smem:[#allocation30_spill]] %s1896_s21  ;;  %v2918_v8 = vstv %s1896_s21 }
  0x70   : > { %2970 = sst [smem:[#allocation31_spill]] %s1904_s24 }
  0x71   : > { %s1931_s11 = sld [smem:[#allocation7 + $0x4]] }
  0x72   : > { %484 = vrot.lane.b32.xlu2 %v452_v11, %s1648_s26  ;;  %s1948_s4 = sld [smem:[#allocation7 + $0xb]] }
  0x73   : > { %s1952_s2 = sld [smem:[#allocation7 + $0x5]] }
  0x74   : > { %408 = vrot.lane.b32.xlu1 %v362_v13, %s1648_s26  ;;  %406 = vrot.lane.b32.xlu0 %v361_v12, %s1648_s26  ;;  %s1965_s7 = sld [smem:[#allocation7 + $0xc]] }
  0x75   : > { %s2010_s13 = sld [smem:[#allocation7 + $0x56]] }
  0x76   : > { %s2015_s23 = sld [smem:[#allocation7 + $0x35]] }
  0x77   : > { %2971 = sst [smem:[#allocation32_spill]] %s1931_s11 }
  0x78   : > { %2973 = sst [smem:[#allocation34_spill]] %s1948_s4 }
  0x79   : > { %s2027_s0 = sld [smem:[#allocation7 + $0x1e]] }
  0x7a   : > { %423 = vrot.lane.b32.xlu2 %v362_v13, %s1649_s28  ;;  %s2032_s20 = sld [smem:[#allocation7 + $0x3c]] }
  0x7b   : > { %2976 = sst [smem:[#allocation37_spill]] %s2010_s13 }
  0x7c   : > { %421 = vrot.lane.b32.xlu1 %v361_v12, %s1649_s28  ;;  %486 = vrot.lane.b32.xlu0 %v453_v14, %s1648_s26  ;;  %s1833_s26 = sld [smem:[#allocation7 + $0x34]] }
  0x7d   : > { %s2048_s11 = sld [smem:[#allocation7 + $0x43]] }
  0x7e   : > { %s2061_s4 = sld [smem:[#allocation7 + $0x57]] }
  0x7f   : > { %s2086_s21 = sld [smem:[#allocation7 + $0x3d]] }
  0x80   : > { %2979 = sst [smem:[#allocation40_spill]] %s2032_s20 }
  0x81   : > { %s2111_s13 = sld [smem:[#allocation7 + $0x3e]] }
  0x82   : > { %436 = vrot.lane.b32.xlu2 %v361_v12, %s1650_s29  ;;  %v549_v1 = vstv %s1833_s26  ;;  %v723_v12 = vstv %s1887_s9  ;;  %s1976_s26 = sld [smem:[#allocation7 + $0x4e]] }
  0x83   : > { %v1963_v5 = vmul.f32 %v549_v1, %v1797_v9  ;;  %s1996_s9 = sld [smem:[#allocation7 + $0x13]] }
  0x84   : > { %496 = vrot.lane.b32.xlu1 %v453_v14, %s1649_s28  ;;  %494 = vrot.lane.b32.xlu0 %v452_v11, %s1649_s28  ;;  %s1835_s28 = sld [smem:[#allocation7 + $0x3a]] }
  0x85   : > { %s2117_s20 = sld [smem:[#allocation7 + $0x44]] }
  0x86   : > { %s2135_s30 = sld [smem:[#allocation7 + $0x45]] }
  0x87   : > { %s2146_s1 = sld [smem:[#allocation7 + $0x27]] }
  0x88   : > { %2974 = sst [smem:[#allocation35_spill]] %s1976_s26 }
  0x89   : > { %v2921_v3 = vstv %s1996_s9  ;;  %s2067_s26 = sld [smem:[#allocation7 + $0x1f]] }
  0x8a   : > { %506 = vrot.lane.b32.xlu2 %v453_v14, %s1650_s29  ;;  %v2917_v14 = vstv %s1904_s24  ;;  %s2093_s24 = sld [smem:[#allocation7 + $0x37]] }
  0x8b   : > { %s2166_s5 = sld [smem:[#allocation7 + $0x6]] }
  0x8c   : > { %504 = vrot.lane.b32.xlu1 %v452_v11, %s1650_s29  ;;  %438 = vrot.lane.b32.xlu0 %v362_v13, %s1650_s29  ;;  %s1837_s29 = sld [smem:[#allocation7 + $0x3b]] }
  0x8d   : > { %s2183_s14 = sld [smem:[#allocation7 + $0xd]] }
  0x8e   : > { %s2196_s15 = sld [smem:[#allocation7 + $0x58]] }
  0x8f   : > { %s2212_s27 = sld [smem:[#allocation7 + $0x14]] }
  0x92   : > { %v636_v2 = vstv %s1837_s29  ;;  %s1994_s29 = sld [smem:[#allocation7 + $0x12]] }
  0x93   : > { %v1968_v6 = vmul.f32 %v636_v2, %v1797_v9 }
  0x98   : > { %2975 = sst [smem:[#allocation36_spill]] %s1994_s29 }
  0x99   : > { %s2074_s29 = sld [smem:[#allocation7 + $0x36]] }
  0xac   : > { %v455_v15 = vpop.permute.xlu2 %454 }
  0xad   : > { %v461_v18 = vsel %vm367_vm0, 0.0, %v455_v15 }
  0xae   : > { %v1873_v28 = vmul.f32 %v461_v18, %v1849_v16 }
  0xb0   : > { %2967 = vst [vmem:[#allocation28_spill] sm:$0xff] %v1873_v28  ;;  %v1909_v45 = vmul.f32 %v604_v34, %v1873_v28  ;;  %v1913_v47 = vmul.f32 %v517_v27, %v1873_v28  ;;  %v1921_v50 = vmul.f32 %v691_v39, %v1873_v28  ;;  %v1981_v13 = vmul.f32 %v2892_v0, %v1873_v28 }
  0xb4   : > { %v457_v17 = vpop.permute.xlu2 %456 }
  0xb5   : > { %v458_v29 = vsel %vm367_vm0, %v455_v15, %v457_v17 }
  0xb6   : > { %v1899_v40 = vmul.f32 %v458_v29, %v1860_v21  ;;  %v2003_v29 = vmul.f32 %v723_v12, %v1797_v9 }
  0xb8   : > { %v1934_v57 = vmul.f32 %v517_v27, %v1899_v40  ;;  %v1937_v58 = vmul.f32 %v691_v39, %v1899_v40  ;;  %v1940_v59 = vmul.f32 %v604_v34, %v1899_v40  ;;  %v1960_v4 = vmul.f32 %v2889_v54, %v1899_v40 }
  0xbc   : > { %v1906_v44 = vpop.permute.xlu2 %391 }
  0xbd   : > { %v399_v49 = vsel %vm395_vm1, 0.0, %v1906_v44 }
  0xbe   : > { %v1945_v61 = vmul.f32 %v2902_v24, %v399_v49 }
  0xc0   : > { %2972 = vst [vmem:[#allocation33_spill] sm:$0xff] %v1945_v61  ;;  %v618_v18 = vmul.f32 %v2894_v41, %v1945_v61  ;;  %v531_v20 = vmul.f32 %v2901_v36, %v1945_v61  ;;  %v705_v23 = vmul.f32 %v2898_v43, %v1945_v61  ;;  %v2922_v36 = vstv %s1965_s7 }
  0xc4   : > { %v1984_v15 = vpop.permute.xlu2 %476 }
  0xc6   : > { %v375_v39 = vpop.permute.xlu1 %374  ;;  %v364_v49 = vpop.permute.xlu0 %363 }
  0xc7   : > { %v382_v0 = vsel %vm378_vm2, 0.0, %v375_v39  ;;  %v371_v12 = vsel %vm367_vm0, 0.0, %v364_v49 }
  0xc8   : > { %v2020_v11 = vmul.f32 %v2905_v22, %v382_v0  ;;  %v2023_v54 = vmul.f32 %v371_v12, %v1849_v16 }
  0xca   : > { %2977 = vst [vmem:[#allocation38_spill] sm:$0xff] %v2020_v11  ;;  %v602_v12 = vmul.f32 %v601_v33, %v2023_v54  ;;  %v608_v56 = vmul.f32 %v607_v37, %v2020_v11  ;;  %v515_v2 = vmul.f32 %v514_v26, %v2023_v54  ;;  %v521_v41 = vmul.f32 %v520_v32, %v2020_v11 }
  0xcb   : > { %2978 = vst [vmem:[#allocation39_spill] sm:$0xff] %v2023_v54  ;;  %v689_v0 = vmul.f32 %v688_v38, %v2023_v54  ;;  %v695_v60 = vmul.f32 %v694_v42, %v2020_v11 }
  0xcc   : > { %v2057_v19 = vpop.permute.xlu2 %484  ;;  %v610_v17 = vadd.f32 %v608_v56, %v602_v12  ;;  %v523_v53 = vadd.f32 %v521_v41, %v515_v2  ;;  %v852_v41 = vmul.f32 %v2918_v8, %v2023_v54 }
  0xcd   : > { %v697_v34 = vadd.f32 %v695_v60, %v689_v0 }
  0xce   : > { %v377_v43 = vpop.permute.xlu1 %376  ;;  %v366_v22 = vpop.permute.xlu0 %365  ;;  %v620_v27 = vadd.f32 %v618_v18, %v610_v17  ;;  %v533_v1 = vadd.f32 %v531_v20, %v523_v53  ;;  %v858_v53 = vmul.f32 %v2917_v14, %v2020_v11  ;;  %v2981_v14 = vrot.slane %v1860_v21, 5 }
  0xcf   : > { %v379_v60 = vsel %vm378_vm2, %v375_v39, %v377_v43  ;;  %v368_v2 = vsel %vm367_vm0, %v364_v49, %v366_v22  ;;  %v707_v0 = vadd.f32 %v705_v23, %v697_v34  ;;  %v2920_v43 = vstv %s2027_s0 }
  0xd0   : > { %v2081_v17 = vmul.f32 %v386_v25, %v379_v60  ;;  %v2084_v18 = vmul.f32 %v368_v2, %v1860_v21  ;;  %v2090_v22 = vadd.f32 %v630_v46, %v620_v27  ;;  %v2099_v34 = vadd.f32 %v543_v48, %v533_v1 }
  0xd1   : > { %v2103_v39 = vadd.f32 %v717_v51, %v707_v0  ;;  %v973_v2 = vstv %s2061_s4  ;;  %s2159_s4 = sld [smem:[#allocation7 + $0x28]] }
  0xd2   : > { %2980 = vst [vmem:[#allocation41_spill] sm:$0xff] %v2081_v17  ;;  %v516_v46 = vmul.f32 %v514_v26, %v2084_v18  ;;  %v522_v27 = vmul.f32 %v520_v32, %v2081_v17  ;;  %v690_v49 = vmul.f32 %v688_v38, %v2084_v18  ;;  %v696_v51 = vmul.f32 %v694_v42, %v2081_v17 }
  0xd3   : > { %v603_v1 = vmul.f32 %v601_v33, %v2084_v18  ;;  %v609_v26 = vmul.f32 %v607_v37, %v2081_v17  ;;  %v940_v32 = vmul.f32 %v2916_v52, %v2084_v18  ;;  %v946_v42 = vmul.f32 %v2919_v55, %v2081_v17 }
  0xd4   : > { %v2131_v12 = vpop.permute.xlu2 %423  ;;  %v2133_v60 = vadd.f32 %v522_v27, %v516_v46  ;;  %v2144_v37 = vadd.f32 %v696_v51, %v690_v49  ;;  %v2149_v0 = vmul.f32 %v973_v2, %v1797_v9  ;;  %v2151_v46 = vadd.f32 %v858_v53, %v852_v41 }
  0xd5   : > { %v429_v33 = vsel %vm425_vm3, %v2131_v12, 0.0  ;;  %v2157_v55 = vadd.f32 %v609_v26, %v603_v1  ;;  %v2161_v49 = vadd.f32 %v946_v42, %v940_v32  ;;  %v877_v51 = vstv %s2067_s26  ;;  %s2538_s26 = sld [smem:[#allocation7 + $0x52]] }
  0xd6   : > { %v467_v27 = vpop.permute.xlu1 %466  ;;  %v465_v52 = vpop.permute.xlu0 %464  ;;  %v2155_v8 = vmul.f32 %v2981_v14, %v429_v33  ;;  %v2172_v53 = vmul.f32 %v2920_v43, %v1945_v61  ;;  %v2983_v1 = vrot.slane %v1849_v16, 1  ;;  %v2186_v42 = vmul.f32 %v877_v51, %v1799_v10 }
  0xd7   : > { %v468_v2 = vsel %vm378_vm2, %v465_v52, %v467_v27  ;;  %v471_v41 = vsel %vm378_vm2, 0.0, %v465_v52  ;;  %v2985_v27 = vstv %s1952_s2  ;;  %v2987_v14 = vstv %s1827_s22 }
  0xd8   : > { %2982 = vst [vmem:[#allocation42_spill] sm:$0xff] %v2155_v8  ;;  %v2176_v26 = vmul.f32 %v471_v41, %v2983_v1  ;;  %v2180_v52 = vmul.f32 %v468_v2, %v386_v25  ;;  %v2192_v41 = vmul.f32 %v2985_v27, %v2155_v8  ;;  %v2986_v25 = vstv %s1815_s10  ;;  %s2332_s10 = sld [smem:[#allocation7 + $0x29]] }
  0xd9   : > { %v2988_v51 = vmov %v2986_v25  ;;  %v2989_v38 = vstv %s1847_s19  ;;  %v2229_v23 = vmul.f32 %v2921_v3, %v2155_v8  ;;  %v2994_v3 = vrot.slane %v1860_v21, 2  ;;  %s3008_s19 = sld [smem:[#allocation34_spill]] }
  0xda   : > { %2984 = vst [vmem:[#allocation43_spill] sm:$0xff] %v2180_v52  ;;  %v527_v2 = vmul.f32 %v2986_v25, %v2180_v52  ;;  %v613_v48 = vmul.f32 %v2987_v14, %v2176_v26  ;;  %v526_v33 = vmul.f32 %v2988_v51, %v2176_v26  ;;  %v700_v27 = vmul.f32 %v2989_v38, %v2176_v26 }
  0xdb   : > { %v2990_v25 = vmov %v2989_v38 }
  0xdc   : > { %v701_v20 = vmul.f32 %v2990_v25, %v2180_v52  ;;  %v2218_v14 = vpop.permute.xlu2 %436  ;;  %v529_v51 = vadd.f32 %v527_v2, %v1934_v57  ;;  %v615_v56 = vadd.f32 %v613_v48, %v1909_v45  ;;  %v528_v38 = vadd.f32 %v526_v33, %v1913_v47 }
  0xdd   : > { %v702_v43 = vadd.f32 %v700_v27, %v1921_v50  ;;  %v2991_v25 = vstv %s1827_s22  ;;  %v2237_v45 = vmul.f32 %v2922_v36, %v2155_v8  ;;  %v2992_v47 = vstv %s1924_s17  ;;  %s2347_s22 = sld [smem:[#allocation7 + $0x59]] }
  0xde   : > { %v703_v63 = vadd.f32 %v701_v20, %v1937_v58  ;;  %v614_v24 = vmul.f32 %v2991_v25, %v2180_v52  ;;  %v475_v1 = vpop.permute.xlu1 %474  ;;  %v394_v57 = vpop.permute.xlu0 %393  ;;  %v951_v50 = vmul.f32 %v2992_v47, %v2180_v52  ;;  %v2923_v20 = vstv %s2159_s4 }
  0xdf   : > { %v478_v48 = vsel %vm395_vm1, %v475_v1, %v1984_v15  ;;  %v481_v33 = vsel %vm395_vm1, 0.0, %v475_v1  ;;  %v396_v2 = vsel %vm395_vm1, %v1906_v44, %v394_v57  ;;  %v2993_v25 = vrot.slane %v1849_v16, 2 }
  0xe0   : > { %v616_v27 = vadd.f32 %v614_v24, %v1940_v59  ;;  %v2256_v36 = vmul.f32 %v478_v48, %v2994_v3  ;;  %v2995_v15 = vmov %v2994_v3  ;;  %v2265_v44 = vadd.f32 %v951_v50, %v1960_v4 }
  0xe1   : > { %v2252_v47 = vmul.f32 %v481_v33, %v2993_v25  ;;  %v2260_v58 = vmul.f32 %v2995_v15, %v396_v2  ;;  %v2271_v24 = vmul.f32 %v2923_v20, %v2155_v8  ;;  %v2996_v59 = vstv %s1809_s6  ;;  %s3010_s6 = sld [smem:[#allocation36_spill]] }
  0xe2   : > { %v2997_v3 = vstv %s1831_s25  ;;  %v2998_v25 = vstv %s1835_s28  ;;  %v3000_v4 = vstv %s1916_s12  ;;  %v3001_v57 = vstv %s1843_s3  ;;  %s3007_s3 = sld [smem:[#allocation32_spill]] }
  0xe3   : > { %v532_v33 = vmul.f32 %v2996_v59, %v2260_v58  ;;  %v537_v48 = vmul.f32 %v2997_v3, %v2256_v36  ;;  %v623_v2 = vmul.f32 %v2998_v25, %v2252_v47  ;;  %v2999_v15 = vmov %v2997_v3  ;;  %s3026_s25 = sld [smem:[#allocation37_spill]] }
  0xe4   : > { %v536_v62 = vmul.f32 %v2999_v15, %v2252_v47  ;;  %v710_v50 = vmul.f32 %v3000_v4, %v2252_v47  ;;  %v706_v20 = vmul.f32 %v3001_v57, %v2260_v58  ;;  %v3002_v32 = vmov %v3000_v4  ;;  %v2295_v59 = vpop.permute.xlu2 %506  ;;  %s2400_s12 = sld [smem:[#allocation7 + $0x5a]] }
  0xe5   : > { %v711_v61 = vmul.f32 %v3002_v32, %v2256_v36  ;;  %v534_v3 = vadd.f32 %v532_v33, %v2133_v60  ;;  %v539_v11 = vadd.f32 %v537_v48, %v529_v51  ;;  %v625_v28 = vadd.f32 %v623_v2, %v615_v56 }
  0xe6   : > { %v538_v25 = vadd.f32 %v536_v62, %v528_v38  ;;  %v511_v15 = vsel %vm440_vm4, %v2295_v59, 0.0  ;;  %v712_v54 = vadd.f32 %v710_v50, %v702_v43  ;;  %v708_v4 = vadd.f32 %v706_v20, %v2144_v37  ;;  %v409_v10 = vpop.permute.xlu1 %408  ;;  %v407_v57 = vpop.permute.xlu0 %406 }
  0xe7   : > { %v713_v1 = vadd.f32 %v711_v61, %v703_v63  ;;  %v3003_v32 = vrot.slane %v1860_v21, 6  ;;  %v3004_v60 = vperm.slane %v1877_v30, 1  ;;  %v3005_v56 = vperm.slane %v1963_v5, 1 }
  0xe8   : > { %v3006_v43 = vperm.slane %v1968_v6, 0  ;;  %v414_v61 = vsel %vm410_vm5, %v409_v10, 0.0  ;;  %v411_v63 = vsel %vm410_vm5, %v407_v57, %v409_v10  ;;  %v3009_v38 = vperm.slane %v1963_v5, 0 }
  0xe9   : > { %v2303_v8 = vmul.f32 %v511_v15, %v3003_v32  ;;  %v548_v62 = vadd.f32 %v3004_v60, %v534_v3  ;;  %v557_v51 = vadd.f32 %v3005_v56, %v539_v11  ;;  %v3011_v30 = vperm.slane %v2003_v29, 0 }
  0xea   : > { %v643_v37 = vadd.f32 %v3006_v43, %v625_v28  ;;  %v556_v20 = vadd.f32 %v3009_v38, %v538_v25  ;;  %v3012_v11 = vrot.slane %v1860_v21, 4  ;;  %v3013_v28 = vrot.slane %v1849_v16, 4 }
  0xeb   : > { %v730_v33 = vadd.f32 %v3011_v30, %v712_v54  ;;  %v3014_v50 = vstv %s2093_s24  ;;  %v3015_v5 = vperm.slane %v1890_v35, 1  ;;  %v3016_v54 = vperm.slane %v2003_v29, 1 }
  0xec   : > { %v2319_v48 = vmul.f32 %v3012_v11, %v414_v61  ;;  %v2323_v2 = vmul.f32 %v3013_v28, %v411_v63  ;;  %v2328_v10 = vmul.f32 %v3014_v50, %v2303_v8  ;;  %v3017_v15 = vstv %s2135_s30 }
  0xed   : > { %v722_v3 = vadd.f32 %v3015_v5, %v708_v4  ;;  %v731_v25 = vadd.f32 %v3016_v54, %v713_v1  ;;  %v2339_v57 = vmul.f32 %v3017_v15, %v2303_v8  ;;  %v3018_v32 = vstv %s1821_s16  ;;  %s3025_s16 = sld [smem:[#allocation26_spill]] }
  0xee   : > { %v619_v60 = vmul.f32 %v3018_v32, %v2260_v58  ;;  %v3019_v56 = vstv %s1835_s28  ;;  %v3020_v35 = vstv %s3007_s3  ;;  %v3021_v61 = vstv %s3008_s19  ;;  %s3034_s28 = sld [smem:[#allocation40_spill]] }
  0xef   : > { %v624_v43 = vmul.f32 %v3019_v56, %v2256_v36  ;;  %v560_v4 = vmul.f32 %v3020_v35, %v2319_v48  ;;  %v646_v29 = vmul.f32 %v3021_v61, %v2323_v2  ;;  %v3022_v1 = vmov %v3020_v35  ;;  %s3075_s3 = sld [smem:[#allocation31_spill]] }
  0xf0   : > { %v559_v63 = vmul.f32 %v3022_v1, %v2323_v2  ;;  %v3023_v38 = vstv %s3010_s6  ;;  %v621_v50 = vadd.f32 %v619_v60, %v2157_v55  ;;  %v3027_v54 = vmov %v3021_v61  ;;  %v422_v60 = vpop.permute.xlu1 %421  ;;  %s2601_s19 = sld [smem:[#allocation7 + $0x2c]] }
  0xf1   : > { %v733_v30 = vmul.f32 %v3023_v38, %v2323_v2  ;;  %v3024_v11 = vmov %v3023_v38  ;;  %v626_v5 = vadd.f32 %v624_v43, %v616_v27  ;;  %v647_v15 = vmul.f32 %v3027_v54, %v2319_v48  ;;  %v487_v43 = vpop.permute.xlu0 %486  ;;  %s2606_s6 = sld [smem:[#allocation7 + $0x5b]] }
  0xf2   : > { %v734_v28 = vmul.f32 %v3024_v11, %v2319_v48  ;;  %v562_v32 = vadd.f32 %v560_v4, %v548_v62  ;;  %v648_v56 = vadd.f32 %v646_v29, %v2090_v22  ;;  %v561_v35 = vadd.f32 %v559_v63, %v2099_v34 }
  0xf3   : > { %v735_v61 = vadd.f32 %v733_v30, %v2103_v39  ;;  %v3028_v38 = vperm.slane %v1880_v31, 1  ;;  %v3029_v11 = vperm.slane %v1968_v6, 1  ;;  %v3030_v55 = vstv %s2111_s13 }
  0xf4   : > { %v736_v1 = vadd.f32 %v734_v28, %v722_v3  ;;  %v2378_v27 = vmul.f32 %v3030_v55, %v2303_v8  ;;  %v2381_v22 = vadd.f32 %v2192_v41, %v562_v32  ;;  %v3031_v34 = vstv %s3025_s16 }
  0xf5   : > { %v635_v52 = vadd.f32 %v3028_v38, %v621_v50  ;;  %v644_v17 = vadd.f32 %v3029_v11, %v626_v5  ;;  %v956_v39 = vmul.f32 %v3031_v34, %v2260_v58  ;;  %v3032_v31 = vstv %s3026_s25 }
  0xf6   : > { %v961_v62 = vmul.f32 %v3032_v31, %v2256_v36  ;;  %v3033_v6 = vstv %s2146_s1  ;;  %v426_v4 = vsel %vm425_vm3, %v422_v60, %v2131_v12  ;;  %v488_v41 = vsel %vm410_vm5, %v2057_v19, %v487_v43 }
  0xf7   : > { %v984_v3 = vmul.f32 %v3033_v6, %v2319_v48  ;;  %v491_v29 = vsel %vm410_vm5, %v487_v43, 0.0  ;;  %v2398_v63 = vadd.f32 %v2229_v23, %v736_v1  ;;  %v3035_v30 = vrot.slane %v1849_v16, 5 }
  0xf8   : > { %v3036_v12 = vrot.slane %v1849_v16, 4  ;;  %v3037_v19 = vrot.slane %v1860_v21, 4  ;;  %v649_v54 = vadd.f32 %v647_v15, %v635_v52  ;;  %v958_v23 = vadd.f32 %v956_v39, %v2161_v49 }
  0xf9   : > { %v2404_v28 = vmul.f32 %v3035_v30, %v426_v4  ;;  %v963_v32 = vadd.f32 %v961_v62, %v2265_v44  ;;  %v2941_v1 = vstv %s2347_s22  ;;  %v3038_v11 = vstv %s2015_s23  ;;  %s3047_s23 = sld [smem:[#allocation35_spill]] }
  0xfa   : > { %v2408_v50 = vmul.f32 %v488_v41, %v3036_v12  ;;  %v2412_v5 = vmul.f32 %v491_v29, %v3037_v19  ;;  %v3039_v60 = vstv %s3034_s28  ;;  %v3040_v34 = vstv %s1965_s7  ;;  %s2536_s7 = sld [smem:[#allocation7 + $0x51]] }
  0xfb   : > { %v656_v31 = vmul.f32 %v3040_v34, %v2404_v28  ;;  %v3041_v6 = vmov %v3038_v11  ;;  %v3042_v52 = vstv %s1952_s2  ;;  %v3043_v44 = vstv %s2048_s11  ;;  %s2448_s2 = sld [smem:[#allocation7 + $0x4f]] }
  0xfc   : > { %v565_v55 = vmul.f32 %v3038_v11, %v2412_v5  ;;  %v651_v43 = vmul.f32 %v3039_v60, %v2408_v50  ;;  %v564_v4 = vmul.f32 %v3041_v6, %v2408_v50  ;;  %v569_v49 = vmul.f32 %v3042_v52, %v2404_v28  ;;  %s2460_s11 = sld [smem:[#allocation7 + $0x50]] }
  0xfd   : > { %v738_v15 = vmul.f32 %v3043_v44, %v2408_v50  ;;  %v3044_v39 = vstv %s1996_s9  ;;  %v3045_v41 = vmov %v3043_v44  ;;  %v2442_v19 = vadd.f32 %v656_v31, %v648_v56  ;;  %v497_v44 = vpop.permute.xlu1 %496  ;;  %s1652_s9 = smov 32  }
  0xfe   : > { %v743_v62 = vmul.f32 %v3044_v39, %v2404_v28  ;;  %v739_v29 = vmul.f32 %v3045_v41, %v2412_v5  ;;  %v567_v30 = vadd.f32 %v565_v55, %v557_v51  ;;  %v653_v12 = vadd.f32 %v651_v43, %v643_v37  ;;  %v495_v39 = vpop.permute.xlu0 %494 }
  0xff   : > { %v566_v11 = vadd.f32 %v564_v4, %v556_v20  ;;  %v2444_v60 = vadd.f32 %v569_v49, %v561_v35  ;;  %v740_v34 = vadd.f32 %v738_v15, %v730_v33  ;;  %v3046_v41 = vstv %s3034_s28  ;;  %s2613_s28 = sld [smem:[#allocation7 + $0x5c]] }
 0x100   : > { %v2446_v6 = vadd.f32 %v743_v62, %v735_v61  ;;  %v741_v52 = vadd.f32 %v739_v29, %v731_v25  ;;  %v652_v51 = vmul.f32 %v3046_v41, %v2412_v5  ;;  %v2454_v37 = vadd.f32 %v2237_v45, %v649_v54 }
 0x101   : > { %v3048_v20 = vperm.slane %v1971_v7, 1  ;;  %v3049_v33 = vperm.slane %v2149_v0, 1  ;;  %v501_v35 = vsel %vm425_vm3, %v497_v44, 0.0  ;;  %v498_v61 = vsel %vm425_vm3, %v495_v39, %v497_v44 }
 0x102   : > { %v3050_v45 = vstv %s2196_s15  ;;  %v2940_v55 = vstv %s2400_s12  ;;  %v654_v4 = vadd.f32 %v652_v51, %v644_v17  ;;  %v3053_v29 = vstv %s3047_s23 }
 0x103   : > { %v972_v56 = vadd.f32 %v3048_v20, %v958_v23  ;;  %v981_v25 = vadd.f32 %v3049_v33, %v963_v32  ;;  %v989_v54 = vmul.f32 %v3050_v45, %v2412_v5  ;;  %v3051_v23 = vrot.slane %v1860_v21, 5 }
 0x104   : > { %v3052_v32 = vrot.slane %v1849_v16, 5  ;;  %v1009_v62 = vmul.f32 %v2940_v55, %v2303_v8  ;;  %v863_v44 = vmul.f32 %v3053_v29, %v2176_v26  ;;  %v870_v39 = vadd.f32 %v2172_v53, %v2151_v46 }
 0x105   : > { %v2470_v43 = vmul.f32 %v501_v35, %v3051_v23  ;;  %v986_v49 = vadd.f32 %v984_v3, %v972_v56  ;;  %v991_v15 = vadd.f32 %v989_v54, %v981_v25  ;;  %v3054_v41 = vstv %s2074_s29  ;;  %v505_v55 = vpop.permute.xlu1 %504  ;;  %s2570_s29 = sld [smem:[#allocation7 + $0x22]] }
 0x106   : > { %v2474_v31 = vmul.f32 %v498_v61, %v3052_v32  ;;  %v3055_v33 = vstv %s2086_s21  ;;  %v3056_v61 = vmov %v3054_v41  ;;  %v3057_v3 = vstv %s2117_s20  ;;  %v439_v38 = vpop.permute.xlu0 %438  ;;  %s2510_s20 = sld [smem:[#allocation7 + $0x20]] }
 0x107   : > { %v575_v20 = vmul.f32 %v3054_v41, %v2470_v43  ;;  %v3058_v56 = vmov %v3057_v3  ;;  %v3059_v45 = vmov %v3055_v33  ;;  %v2503_v46 = vadd.f32 %v2271_v24, %v986_v49  ;;  %s2521_s21 = sld [smem:[#allocation7 + $0x21]] }
 0x108   : > { %v661_v35 = vmul.f32 %v3055_v33, %v2474_v31  ;;  %v574_v17 = vmul.f32 %v3056_v61, %v2474_v31  ;;  %v748_v51 = vmul.f32 %v3057_v3, %v2474_v31  ;;  %v749_v25 = vmul.f32 %v3058_v56, %v2470_v43 }
 0x109   : > { %v662_v54 = vmul.f32 %v3059_v45, %v2470_v43  ;;  %v999_v53 = vmul.f32 %v2941_v1, %v2470_v43  ;;  %v577_v23 = vadd.f32 %v575_v20, %v567_v30  ;;  %v865_v56 = vadd.f32 %v863_v44, %v1981_v13 }
 0x10a   : > { %v663_v32 = vadd.f32 %v661_v35, %v653_v12  ;;  %v576_v29 = vadd.f32 %v574_v17, %v566_v11  ;;  %v750_v41 = vadd.f32 %v748_v51, %v740_v34  ;;  %v751_v33 = vadd.f32 %v749_v25, %v741_v52 }
 0x10b   : > { %v664_v61 = vadd.f32 %v662_v54, %v654_v4  ;;  %v1001_v3 = vadd.f32 %v999_v53, %v991_v15  ;;  %v587_v45 = vadd.f32 %v2328_v10, %v577_v23  ;;  %v872_v24 = vstv %s2448_s2  ;;  %s2647_s2 = sld [smem:[#allocation7 + $0x2f]] }
 0x10c   : > { %v880_v49 = vperm.slane %v2186_v42, 0  ;;  %v886_v1 = vstv %s2460_s11  ;;  %v508_v30 = vsel %vm440_vm4, %v505_v55, %v2295_v59  ;;  %v441_v12 = vsel %vm440_vm4, %v2218_v14, %v439_v38  ;;  %s2622_s11 = sld [smem:[#allocation7 + $0x5d]] }
 0x10d   : > { %v444_v13 = vsel %vm440_vm4, %v439_v38, 0.0  ;;  %v761_v10 = vadd.f32 %v2339_v57, %v751_v33  ;;  %v3060_v11 = vrot.slane %v1849_v16, 6  ;;  %v3062_v14 = vrot.slane %v1860_v21, 6 }
 0x10e   : > { %v674_v57 = vadd.f32 %v2378_v27, %v664_v61  ;;  %v1011_v55 = vadd.f32 %v1009_v62, %v1001_v3  ;;  %v873_v4 = vmul.f32 %v872_v24, %v2252_v47  ;;  %v884_v15 = vadd.f32 %v880_v49, %v870_v39 }
 0x10f   : > { %v2525_v34 = vmul.f32 %v508_v30, %v3060_v11  ;;  %v3061_v59 = vmov %v3060_v11  ;;  %v2533_v38 = vmul.f32 %v3062_v14, %v444_v13  ;;  %v2544_v16 = vmul.f32 %v886_v1, %v1797_v9 }
 0x110   : > { %v2529_v52 = vmul.f32 %v3061_v59, %v441_v12  ;;  %v3063_v44 = vstv %s2166_s5  ;;  %v3064_v20 = vstv %s2183_s14  ;;  %v3065_v27 = vstv %s2111_s13  ;;  %s2575_s13 = sld [smem:[#allocation7 + $0x53]] }
 0x111   : > { %v580_v21 = vmul.f32 %v3063_v44, %v2533_v38  ;;  %v671_v17 = vmul.f32 %v3065_v27, %v2525_v34  ;;  %v3066_v62 = vmov %v3063_v44  ;;  %v3067_v25 = vstv %s2093_s24  ;;  %s1651_s24 = smov 48   ;;  %s3073_s5 = sld [smem:[#allocation30_spill]] }
 0x112   : > { %v666_v35 = vmul.f32 %v3064_v20, %v2529_v52  ;;  %v579_v51 = vmul.f32 %v3066_v62, %v2529_v52  ;;  %v584_v54 = vmul.f32 %v3067_v25, %v2525_v34  ;;  %v3068_v39 = vstv %s2212_s27  ;;  %s3074_s27 = sld [smem:[#allocation29_spill]] }
 0x113   : > { %v753_v1 = vmul.f32 %v3068_v39, %v2529_v52  ;;  %v3069_v53 = vstv %s2135_s30  ;;  %v3070_v33 = vmov %v3068_v39  ;;  %v582_v3 = vadd.f32 %v580_v21, %v2381_v22  ;;  %s2590_s30 = sld [smem:[#allocation7 + $0x2a]] }
 0x114   : > { %v758_v23 = vmul.f32 %v3069_v53, %v2525_v34  ;;  %v754_v61 = vmul.f32 %v3070_v33, %v2533_v38  ;;  %v668_v49 = vadd.f32 %v666_v35, %v2442_v19  ;;  %v673_v30 = vadd.f32 %v671_v17, %v663_v32 }
 0x115   : > { %v581_v12 = vadd.f32 %v579_v51, %v2444_v60  ;;  %v586_v13 = vadd.f32 %v584_v54, %v576_v29  ;;  %v755_v11 = vadd.f32 %v753_v1, %v2446_v6  ;;  %v589_v44 = vadd.f32 %v587_v45, %v582_v3 }
 0x116   : > { %v760_v59 = vadd.f32 %v758_v23, %v750_v41  ;;  %v756_v14 = vadd.f32 %v754_v61, %v2398_v63  ;;  %v675_v20 = vadd.f32 %v673_v30, %v668_v49  ;;  %v3071_v27 = vstv %s2183_s14  ;;  %s2596_s14 = sld [smem:[#allocation7 + $0x2b]]  ;;  %v3078_v30 = vld [vmem:[#allocation41_spill] sm:$0xff] }
 0x117   : > { %v667_v62 = vmul.f32 %v3071_v27, %v2533_v38  ;;  %v3072_v22 = vstv %s2332_s10  ;;  %v588_v32 = vadd.f32 %v586_v13, %v581_v12  ;;  %v875_v21 = vadd.f32 %v873_v4, %v865_v56  ;;  %594 = vrot.lane.b32.xlu1 %v589_v44, %s1651_s24 }
 0x118   : > { %v1004_v19 = vmul.f32 %v3072_v22, %v2533_v38  ;;  %v762_v60 = vadd.f32 %v760_v59, %v755_v11  ;;  %v763_v29 = vadd.f32 %v761_v10, %v756_v14  ;;  %679 = vrot.lane.b32.xlu2 %v675_v20, %s1652_s9  ;;  %v889_v41 = vperm.slane %v2544_v16, 0  ;;  %v3080_v59 = vld [vmem:[#allocation43_spill] sm:$0xff] }
 0x119   : > { %v669_v63 = vadd.f32 %v667_v62, %v2454_v37  ;;  %v895_v45 = vstv %s2510_s20  ;;  %592 = vrot.lane.b32.xlu0 %v588_v32, %s1651_s24  ;;  %v900_v10 = vstv %s2536_s7  ;;  %v905_v56 = vstv %s2521_s21  ;;  %s2633_s20 = sld [smem:[#allocation7 + $0x2d]]  ;;  %s1653_s7 = smov 16  }
 0x11a   : > { %v1006_v6 = vadd.f32 %v1004_v19, %v2503_v46  ;;  %v896_v35 = vmul.f32 %v895_v45, %v2323_v2  ;;  %v910_v4 = vstv %s2538_s26  ;;  %v893_v46 = vadd.f32 %v889_v41, %v875_v21  ;;  %s2637_s21 = sld [smem:[#allocation7 + $0x5e]]  ;;  %s1654_s24 = smov 96  }
 0x11b   : > { %v676_v17 = vadd.f32 %v674_v57, %v669_v63  ;;  %v901_v51 = vmul.f32 %v900_v10, %v2408_v50  ;;  %v906_v54 = vmul.f32 %v905_v56, %v2404_v28  ;;  %v911_v39 = vmul.f32 %v910_v4, %v2474_v31  ;;  %s2653_s26 = sld [smem:[#allocation7 + $0x60]] }
 0x11c   : > { %v2598_v37 = vadd.f32 %v1011_v55, %v1006_v6  ;;  %v898_v25 = vadd.f32 %v896_v35, %v884_v15  ;;  %v915_v1 = vstv %s2570_s29  ;;  %v920_v53 = vstv %s2575_s13  ;;  %s2658_s29 = sld [smem:[#allocation7 + $0x30]] }
 0x11d   : > { %v903_v57 = vadd.f32 %v901_v51, %v893_v46  ;;  %v916_v55 = vmul.f32 %v915_v1, %v2529_v52  ;;  %v3076_v23 = vstv %s3073_s5  ;;  %v921_v61 = vmul.f32 %v920_v53, %v2525_v34  ;;  %s2663_s13 = sld [smem:[#allocation7 + $0x61]] }
 0x11e   : > { %v853_v33 = vmul.f32 %v3076_v23, %v2084_v18  ;;  %v908_v15 = vadd.f32 %v906_v54, %v898_v25  ;;  %v3077_v3 = vstv %s3074_s27  ;;  %v3079_v12 = vstv %s3075_s3  ;;  %s2762_s5 = sld [smem:[#allocation7 + $0x1a]] }
 0x11f   : > { %v856_v49 = vmul.f32 %v3077_v3, %v1899_v40  ;;  %v859_v13 = vmul.f32 %v3079_v12, %v3078_v30  ;;  %v913_v11 = vadd.f32 %v911_v39, %v903_v57  ;;  %v3081_v14 = vstv %s3047_s23  ;;  %766 = vrot.lane.b32.xlu1 %v762_v60, %s1653_s7  ;;  %s2651_s23 = sld [smem:[#allocation7 + $0x5f]] }
 0x120   : > { %v864_v44 = vmul.f32 %v3081_v14, %v3080_v59  ;;  %v3082_v20 = vstv %s2027_s0  ;;  %v874_v62 = vmul.f32 %v872_v24, %v2256_v36  ;;  %v918_v22 = vadd.f32 %v916_v55, %v908_v15  ;;  %768 = vrot.lane.b32.xlu2 %v763_v29, %s1653_s7  ;;  %s2640_s0 = sld [smem:[#allocation7 + $0x2e]] }
 0x121   : > { %v869_v27 = vmul.f32 %v3082_v20, %v2260_v58  ;;  %v861_v19 = vadd.f32 %v859_v13, %v853_v33  ;;  %v881_v32 = vperm.slane %v2186_v42, 1  ;;  %v890_v21 = vperm.slane %v2544_v16, 1  ;;  %681 = vrot.lane.b32.xlu0 %v676_v17, %s1652_s9  ;;  %v3083_v16 = vld [vmem:[#allocation42_spill] sm:$0xff]  ;;  %s1655_s9 = smov 112   ;;  %s2773_s27 = sld [smem:[#allocation7 + $0x1b]] }
 0x122   : > { %v923_v63 = vadd.f32 %v921_v61, %v913_v11  ;;  %v866_v6 = vadd.f32 %v864_v44, %v856_v49  ;;  %v897_v41 = vmul.f32 %v895_v45, %v2319_v48  ;;  %v1025_v24 = vstv %s2590_s30  ;;  %s3089_s30 = sld [smem:[#allocation27_spill]] }
 0x123   : > { %v871_v35 = vadd.f32 %v869_v27, %v861_v19  ;;  %v902_v42 = vmul.f32 %v900_v10, %v2412_v5  ;;  %v907_v46 = vmul.f32 %v905_v56, %v3083_v16  ;;  %v912_v51 = vmul.f32 %v910_v4, %v2470_v43  ;;  %v3084_v27 = vld [vmem:[#allocation25_spill] sm:$0xff]  ;;  %s2783_s3 = sld [smem:[#allocation7 + $0x4c]] }
 0x124   : > { %v925_v60 = vadd.f32 %v923_v63, %v918_v22  ;;  %v876_v29 = vadd.f32 %v874_v62, %v866_v6  ;;  %v917_v45 = vmul.f32 %v915_v1, %v2533_v38  ;;  %v922_v25 = vmul.f32 %v920_v53, %v2303_v8 }
 0x125   : > { %v885_v17 = vadd.f32 %v881_v32, %v871_v35  ;;  %v1027_v10 = vmul.f32 %v1025_v24, %v2084_v18  ;;  %v1028_v56 = vstv %s2606_s6  ;;  %v1031_v4 = vstv %s2596_s14  ;;  %s2767_s14 = sld [smem:[#allocation7 + $0x4b]] }
 0x126   : > { %v894_v54 = vadd.f32 %v890_v21, %v876_v29  ;;  %v1030_v39 = vmul.f32 %v1028_v56, %v1899_v40  ;;  %v1033_v1 = vmul.f32 %v1031_v4, %v3078_v30  ;;  %v1036_v57 = vstv %s2613_s28  ;;  %s3102_s6 = sld [smem:[#allocation24_spill]] }
 0x127   : > { %v899_v55 = vadd.f32 %v897_v41, %v885_v17  ;;  %v1038_v53 = vmul.f32 %v1036_v57, %v3080_v59  ;;  %v1041_v23 = vstv %s2601_s19  ;;  %v1046_v33 = vstv %s2622_s11  ;;  %1018 = vrot.lane.b32.xlu1 %v2598_v37, %s1654_s24  ;;  %s2813_s19 = sld [smem:[#allocation2]] }
 0x128   : > { %v904_v15 = vadd.f32 %v902_v42, %v894_v54  ;;  %v1035_v61 = vadd.f32 %v1033_v1, %v1027_v10  ;;  %v1043_v3 = vmul.f32 %v1041_v23, %v2260_v58  ;;  %v1048_v49 = vmul.f32 %v1046_v33, %v2256_v36  ;;  %929 = vrot.lane.b32.xlu2 %v925_v60, %s1655_s9  ;;  %s3103_s28 = sld [smem:[#allocation19_spill]] }
 0x129   : > { %v909_v12 = vadd.f32 %v907_v46, %v899_v55  ;;  %v1040_v13 = vadd.f32 %v1038_v53, %v1030_v39  ;;  %v1051_v11 = vstv %s2633_s20  ;;  %v1060_v14 = vstv %s2637_s21  ;;  %v3085_v55 = vld [vmem:[#allocation39_spill] sm:$0xff] }
 0x12a   : > { %v914_v44 = vadd.f32 %v912_v51, %v904_v15  ;;  %v1045_v20 = vadd.f32 %v1043_v3, %v1035_v61  ;;  %v1052_v62 = vmul.f32 %v1051_v11, %v3084_v27  ;;  %v1069_v22 = vstv %s2640_s0  ;;  %v3086_v61 = vld [vmem:[#allocation28_spill] sm:$0xff]  ;;  %s3104_s0 = sld [smem:[#allocation47_spill]] }
 0x12b   : > { %v919_v19 = vadd.f32 %v917_v45, %v909_v12  ;;  %v1050_v32 = vadd.f32 %v1048_v49, %v1040_v13  ;;  %v1061_v21 = vmul.f32 %v1060_v14, %v1797_v9  ;;  %v1071_v63 = vmul.f32 %v1069_v22, %v2319_v48  ;;  %v3087_v49 = vld [vmem:[#allocation38_spill] sm:$0xff]  ;;  %v3088_v14 = vld [vmem:[#allocation33_spill] sm:$0xff] }
 0x12c   : > { %v924_v6 = vadd.f32 %v922_v25, %v914_v44  ;;  %v1055_v41 = vperm.slane %v1052_v62, 1  ;;  %v1074_v35 = vstv %s2651_s23  ;;  %v1079_v37 = vstv %s2647_s2  ;;  %s1297_s11 = sshll.u32 %s3102_s6, 1 }
 0x12d   : > { %v1064_v42 = vperm.slane %v1061_v21, 1  ;;  %v1076_v46 = vmul.f32 %v1074_v35, %v2412_v5  ;;  %v1081_v51 = vmul.f32 %v1079_v37, %v3083_v16  ;;  %v1084_v60 = vstv %s2653_s26  ;;  %s245_s23 = scalar_lea.vmem [#allocation10], %s1297_s11 }
 0x12e   : > { %v926_v29 = vadd.f32 %v924_v6, %v919_v19  ;;  %v1059_v17 = vadd.f32 %v1055_v41, %v1045_v20  ;;  %v1086_v45 = vmul.f32 %v1084_v60, %v2470_v43  ;;  %v1089_v10 = vstv %s2658_s29  ;;  %s1401_s20 = sshll.u32 %s3103_s28, 1  ;;  %s1190_s26 = sshll.u32 %s245_s23, 4  ;;  %s1191_s26 = int_to_ptr.vmem [resolvable:$true] %s1190_s26 }
 0x12f   : > { %v1068_v54 = vadd.f32 %v1064_v42, %v1050_v32  ;;  %v1091_v39 = vmul.f32 %v1089_v10, %v2533_v38  ;;  %v1094_v1 = vstv %s2663_s13  ;;  %v1026_v25 = vmul.f32 %v1025_v24, %v3085_v55 }
 0x130   : > { %931 = vrot.lane.b32.xlu0 %v926_v29, %s1655_s9  ;;  %v1073_v53 = vadd.f32 %v1071_v63, %v1059_v17  ;;  %v1096_v15 = vmul.f32 %v1094_v1, %v2303_v8  ;;  %v1029_v3 = vmul.f32 %v1028_v56, %v3086_v61  ;;  %v1032_v12 = vmul.f32 %v1031_v4, %v3087_v49  ;;  %s1188_s2 = scalar_lea.hbm %s3104_s0, %s1401_s20 }
 0x131   : > { %v1078_v13 = vadd.f32 %v1076_v46, %v1068_v54  ;;  %v1037_v11 = vmul.f32 %v1036_v57, %v2176_v26  ;;  %v1042_v44 = vmul.f32 %v1041_v23, %v3088_v14  ;;  %v1047_v20 = vmul.f32 %v1046_v33, %v2252_v47  ;;  %s1192_s29 = sshll.u32 %s1188_s2, 4  ;;  %s1193_s29 = int_to_ptr.hbm [resolvable:$true] %s1192_s29 }
 0x132   : > { %v1083_v19 = vadd.f32 %v1081_v51, %v1073_v53  ;;  %v1034_v32 = vadd.f32 %v1032_v12, %v1026_v25  ;;  %v1054_v24 = vperm.slane %v1052_v62, 0  ;;  %v1063_v41 = vperm.slane %v1061_v21, 0  ;;  %s1581_s9 = sshra.s32 %s1193_s29, 4  ;;  %s1582_s9 = int_to_ptr.hbm [resolvable:$true] %s1581_s9 }
 0x133   : > { %v1088_v63 = vadd.f32 %v1086_v45, %v1078_v13  ;;  %v1039_v6 = vadd.f32 %v1037_v11, %v1029_v3  ;;  %v1070_v56 = vmul.f32 %v1069_v22, %v2323_v2  ;;  %v1075_v57 = vmul.f32 %v1074_v35, %v2408_v50  ;;  %p1588_p9 = scmp.lt.s32.totalorder %s1582_s9, %s3104_s0 }
 0x134   : > { %v1093_v4 = vadd.f32 %v1091_v39, %v1083_v19  ;;  %v1044_v42 = vadd.f32 %v1042_v44, %v1034_v32  ;;  %v1080_v23 = vmul.f32 %v1079_v37, %v2404_v28  ;;  %v1085_v51 = vmul.f32 %v1084_v60, %v2474_v31 }
 0x135   : > { %v1098_v33 = vadd.f32 %v1096_v15, %v1088_v63  ;;  %v1049_v46 = vadd.f32 %v1047_v20, %v1039_v6  ;;  %v1090_v62 = vmul.f32 %v1089_v10, %v2529_v52  ;;  %v3090_v21 = vstv %s1851_s18  ;;  %s1656_s18 = smov 80  }
 0x136   : > { %v1058_v29 = vadd.f32 %v1054_v24, %v1044_v42  ;;  %v939_v17 = vmul.f32 %v3090_v21, %v3085_v55  ;;  %v3091_v22 = vstv %s3089_s30  ;;  %v3092_v54 = vstv %s1853_s8  ;;  %s2741_s8 = sld [smem:[#allocation7 + $0x16]]  ;;  %s1583_s30 = scalar_lea.hbm %s1582_s9, 2 }
 0x137   : > { %v942_v45 = vmul.f32 %v3091_v22, %v3086_v61  ;;  %v945_v39 = vmul.f32 %v3092_v54, %v3087_v49  ;;  %v1100_v35 = vadd.f32 %v1098_v33, %v1093_v4  ;;  %v1067_v25 = vadd.f32 %v1063_v41, %v1049_v46  ;;  %p1584_p1 = scmp.ne.s32.totalorder %s1582_s9, %s1583_s30 }
 0x138   : > { %v3093_v37 = vstv %s1924_s17  ;;  %v3094_v60 = vstv %s3025_s16  ;;  %v1072_v10 = vadd.f32 %v1070_v56, %v1058_v29  ;;  %v3095_v12 = vstv %s3026_s25  ;;  %s2739_s17 = sld [smem:[#allocation7 + $0x15]] }
 0x139   : > { %v950_v53 = vmul.f32 %v3093_v37, %v2176_v26  ;;  %v955_v15 = vmul.f32 %v3094_v60, %v3088_v14  ;;  %v947_v3 = vadd.f32 %v945_v39, %v939_v17  ;;  %v960_v13 = vmul.f32 %v3095_v12, %v2252_v47  ;;  %1105 = vrot.lane.b32.xlu1 %v1100_v35, %s1656_s18  ;;  %s1373_s16 = sld [smem:[#allocation7 + $0x49]]  ;;  %p1585_p4 = pnand %p1584_p1, %p1751_p3 }
 0x13a   : > { %v967_v11 = vperm.slane %v1971_v7, 0  ;;  %v1077_v44 = vadd.f32 %v1075_v57, %v1067_v25  ;;  %v1095_v20 = vmul.f32 %v1094_v1, %v2525_v34  ;;  %v976_v32 = vperm.slane %v2149_v0, 0  ;;  %s2753_s25 = sld [smem:[#allocation7 + $0x19]] }
 0x13b   : > { %v952_v19 = vadd.f32 %v950_v53, %v942_v45  ;;  %v1082_v24 = vadd.f32 %v1080_v23, %v1072_v10  ;;  %v957_v63 = vadd.f32 %v955_v15, %v947_v3  ;;  %v3096_v6 = vstv %s2146_s1  ;;  %s2743_s1 = sld [smem:[#allocation7 + $0x17]]  ;;  %p1586_p8 = pneg %p1585_p4 }
 0x13c   : > { %v983_v41 = vmul.f32 %v3096_v6, %v2323_v2  ;;  %v1087_v56 = vadd.f32 %v1085_v51, %v1077_v44  ;;  %v3097_v7 = vstv %s2196_s15  ;;  %v3098_v57 = vstv %s2159_s4  ;;  %s1324_s4 = sld [smem:[#allocation7 + $0x18]] }
 0x13d   : > { %v962_v4 = vadd.f32 %v960_v13, %v952_v19  ;;  %v988_v42 = vmul.f32 %v3097_v7, %v2408_v50  ;;  %v1092_v33 = vadd.f32 %v1090_v62, %v1082_v24  ;;  %v971_v46 = vadd.f32 %v967_v11, %v957_v63  ;;  %s2745_s15 = sld [smem:[#allocation7 + $0x46]] }
 0x13e   : > { %v993_v1 = vmul.f32 %v3098_v57, %v2404_v28  ;;  %v1097_v29 = vadd.f32 %v1095_v20, %v1087_v56  ;;  %v3099_v0 = vstv %s2347_s22  ;;  %v3100_v22 = vstv %s2332_s10  ;;  %s2747_s10 = sld [smem:[#allocation7 + $0x47]] }
 0x13f   : > { %v980_v21 = vadd.f32 %v976_v32, %v962_v4  ;;  %v998_v23 = vmul.f32 %v3099_v0, %v2474_v31  ;;  %v985_v17 = vadd.f32 %v983_v41, %v971_v46  ;;  %v1003_v45 = vmul.f32 %v3100_v22, %v2529_v52  ;;  %s2749_s22 = sld [smem:[#allocation7 + $0x48]] }
 0x140   : > { %v1099_v54 = vadd.f32 %v1097_v29, %v1092_v33  ;;  %v3101_v39 = vstv %s2400_s12  ;;  %s2755_s12 = sld [smem:[#allocation7 + $0x4a]]  ;;  %v775_v10 = vstv %s2739_s17  ;;  %v781_v3 = vstv %s2741_s8  ;;  %s1587_s8 = scalar_lea.hbm %s3104_s0, 4 }
 0x141   : > { %v990_v51 = vadd.f32 %v988_v42, %v980_v21  ;;  %v1008_v35 = vmul.f32 %v3101_v39, %v2525_v34  ;;  %v995_v25 = vadd.f32 %v993_v1, %v985_v17  ;;  %v777_v11 = vmul.f32 %v775_v10, %v2084_v18  ;;  %p1589_p2 = scmp.lt.s32.totalorder %s1587_s8, %s1583_s30 }
 0x142   : > { %1103 = vrot.lane.b32.xlu2 %v1099_v54, %s1656_s18  ;;  %v783_v20 = vmul.f32 %v781_v3, %v3078_v30  ;;  %v791_v19 = vstv %s2743_s1  ;;  %v801_v24 = vstv %s1324_s4  ;;  %v810_v63 = vstv %s1373_s16 }
 0x143   : > { %v1000_v62 = vadd.f32 %v998_v23, %v990_v51  ;;  %v1005_v37 = vadd.f32 %v1003_v45, %v995_v25  ;;  %v778_v44 = vstv %s2745_s15  ;;  %v793_v41 = vmul.f32 %v791_v19, %v2260_v58  ;;  %p1590_p10 = por %p1589_p2, %p1588_p9 }
 0x144   : > { %v786_v12 = vstv %s2747_s10  ;;  %v780_v18 = vmul.f32 %v778_v44, %v1899_v40  ;;  %v785_v56 = vadd.f32 %v783_v20, %v777_v11  ;;  %v2778_v4 = vmul.f32 %v801_v24, %v3084_v27 }
 0x145   : > { %v1010_v53 = vadd.f32 %v1008_v35, %v1000_v62  ;;  %v796_v32 = vstv %s2749_s22  ;;  %v788_v6 = vmul.f32 %v786_v12, %v3080_v59  ;;  %v2781_v7 = vmul.f32 %v810_v63, %v1797_v9  ;;  %p1591_p11 = pnand %p1590_p10, %p1586_p8 }
 0x146   : > { %v798_v30 = vmul.f32 %v796_v32, %v2256_v36  ;;  %v819_v59 = vstv %s2753_s25  ;;  %v795_v42 = vadd.f32 %v793_v41, %v785_v56  ;;  %v805_v33 = vperm.slane %v2778_v4, 1 }
 0x147   : > { %v1012_v60 = vadd.f32 %v1010_v53, %v1005_v37  ;;  %v790_v58 = vadd.f32 %v788_v6, %v780_v18  ;;  %v824_v40 = vstv %s2755_s12  ;;  %v814_v36 = vperm.slane %v2781_v7, 1 }
 0x148   : > { %v821_v27 = vmul.f32 %v819_v59, %v2319_v48  ;;  %v829_v1 = vstv %s2762_s5  ;;  %v834_v9 = vstv %s2767_s14  ;;  %v809_v21 = vadd.f32 %v805_v33, %v795_v42 }
 0x149   : > { %1016 = vrot.lane.b32.xlu0 %v1012_v60, %s1654_s24  ;;  %v800_v57 = vadd.f32 %v798_v30, %v790_v58  ;;  %v826_v0 = vmul.f32 %v824_v40, %v2412_v5  ;;  %v839_v17 = vstv %s2773_s27  ;;  %v831_v54 = vmul.f32 %v829_v1, %v3083_v16  ;;  %s1178_s24 = scalar_lea.sflag [#allocation5], %s3102_s6 }
 0x14a   : > { %v823_v45 = vadd.f32 %v821_v27, %v809_v21  ;;  %v836_v51 = vmul.f32 %v834_v9, %v2470_v43  ;;  %v776_v39 = vmul.f32 %v775_v10, %v3085_v55  ;;  %v782_v35 = vmul.f32 %v781_v3, %v3087_v49 }
 0x14b   : > { %v818_v22 = vadd.f32 %v814_v36, %v800_v57  ;;  %v844_v48 = vstv %s2783_s3  ;;  %v841_v62 = vmul.f32 %v839_v17, %v2533_v38  ;;  %v787_v37 = vmul.f32 %v786_v12, %v2176_v26 }
 0x14c   : > { %v833_v53 = vadd.f32 %v831_v54, %v823_v45  ;;  %v846_v60 = vmul.f32 %v844_v48, %v2303_v8  ;;  %v779_v20 = vmul.f32 %v778_v44, %v3086_v61  ;;  %v784_v16 = vadd.f32 %v782_v35, %v776_v39 }
 0x14d   : > { %v828_v25 = vadd.f32 %v826_v0, %v818_v22  ;;  %v792_v43 = vmul.f32 %v791_v19, %v3088_v14  ;;  %v797_v55 = vmul.f32 %v796_v32, %v2252_v47  ;;  %v804_v47 = vperm.slane %v2778_v4, 0 }
 0x14e   : > { %v843_v49 = vadd.f32 %v841_v62, %v833_v53  ;;  %v789_v10 = vadd.f32 %v787_v37, %v779_v20  ;;  %v813_v32 = vperm.slane %v2781_v7, 0  ;;  %v820_v18 = vmul.f32 %v819_v59, %v2323_v2 }
 0x14f   : > { %v838_v5 = vadd.f32 %v836_v51, %v828_v25  ;;  %v794_v14 = vadd.f32 %v792_v43, %v784_v16  ;;  %v825_v56 = vmul.f32 %v824_v40, %v2408_v50  ;;  %v830_v7 = vmul.f32 %v829_v1, %v2404_v28 }
 0x150   : > { %v799_v12 = vadd.f32 %v797_v55, %v789_v10  ;;  %v835_v33 = vmul.f32 %v834_v9, %v2474_v31  ;;  %v1125_v21 = vstv %s2813_s19  ;;  %v845_v2 = vmul.f32 %v844_v48, %v2525_v34 }
 0x151   : > { %v848_v38 = vadd.f32 %v846_v60, %v838_v5  ;;  %v808_v58 = vadd.f32 %v804_v47, %v794_v14  ;;  %vm1169_vm3 = vcmask 1040384  }
 0x152   : > { %v817_v42 = vadd.f32 %v813_v32, %v799_v12 }
 0x153   : > { %v850_v44 = vadd.f32 %v848_v38, %v843_v49  ;;  %v822_v27 = vadd.f32 %v820_v18, %v808_v58 }
 0x154   : > { %v827_v0 = vadd.f32 %v825_v56, %v817_v42 }
 0x155   : > { %v832_v40 = vadd.f32 %v830_v7, %v822_v27 }
 0x156   : > { %v837_v22 = vadd.f32 %v835_v33, %v827_v0 }
 0x158   : > { %v847_v51 = vadd.f32 %v845_v2, %v837_v22 }
 0x172   : > { %v2794_v29 = vpop.permute.xlu2 %679 }
 0x173   : > { %v687_v34 = vsel %vm683_vm7, 0.0, %v2794_v29 }
 0x17a   : > { %v769_v3 = vpop.permute.xlu2 %768 }
 0x182   : > { %v930_v59 = vpop.permute.xlu2 %929 }
 0x189   : > { %v2751_v15 = vpop.permute.xlu1 %594 }
 0x18b   : > { %v2760_v13 = vpop.permute.xlu0 %592 }
 0x18c   : > { %v597_v19 = vsel %vm596_vm8, %v2760_v13, %v2751_v15  ;;  %v600_v1 = vsel %vm596_vm8, 0.0, %v2760_v13 }
 0x18d   : > { %v1112_v62 = vadd.f32 %v687_v34, %v600_v1 }
 0x191   : > { %v2787_v46 = vpop.permute.xlu1 %766 }
 0x192   : > { %v771_v8 = vsel %vm770_vm6, %v2787_v46, %v769_v3  ;;  %v774_v28 = vsel %vm770_vm6, 0.0, %v2787_v46 }
 0x193   : > { %v682_v23 = vpop.permute.xlu0 %681  ;;  %v1115_v6 = vadd.f32 %v850_v44, %v771_v8 }
 0x194   : > { %v684_v61 = vsel %vm683_vm7, %v2794_v29, %v682_v23  ;;  %v840_v23 = vmul.f32 %v839_v17, %v2529_v52 }
 0x195   : > { %v1113_v41 = vadd.f32 %v684_v61, %v597_v19 }
 0x196   : > { %v842_v54 = vadd.f32 %v840_v23, %v832_v40 }
 0x197   : > { %v1119_v57 = vadd.f32 %v1115_v6, %v1113_v41 }
 0x198   : > { %v849_v31 = vadd.f32 %v847_v51, %v842_v54 }
 0x199   : > { %v1019_v11 = vpop.permute.xlu1 %1018 }
 0x19a   : > { %v1024_v24 = vsel %vm1020_vm9, %v1019_v11, 0.0  ;;  %v1114_v9 = vadd.f32 %v849_v31, %v774_v28 }
 0x19c   : > { %v1104_v25 = vpop.permute.xlu2 %1103  ;;  %v1118_v5 = vadd.f32 %v1114_v9, %v1112_v62 }
 0x1a2   : > { %v932_v26 = vpop.permute.xlu0 %931 }
 0x1a3   : > { %v937_v63 = vsel %vm933_vm10, %v932_v26, 0.0  ;;  %v934_v17 = vsel %vm933_vm10, %v930_v59, %v932_v26 }
 0x1a4   : > { %v1117_v30 = vadd.f32 %v1024_v24, %v937_v63  ;;  %v1172_v63 = vlaneseq }
 0x1a6   : > { %vm1174_vm5 = vcmp.lt.s32.totalorder %v1172_v63, 256 }
 0x1ab   : > { %v1106_v4 = vpop.permute.xlu1 %1105 }
 0x1ac   : > { %v1111_v15 = vsel %vm1107_vm11, %v1106_v4, 0.0  ;;  %v1108_v53 = vsel %vm1107_vm11, %v1104_v25, %v1106_v4 }
 0x1ad   : > { %v1121_v36 = vadd.f32 %v1117_v30, %v1111_v15 }
 0x1af   : > { %v1123_v50 = vadd.f32 %v1121_v36, %v1119_v57 }
 0x1b1   : > { %v1127_v45 = vadd.f32 %v1125_v21, %v1123_v50 }
 0x1b3   : > { %v1399_v39 = vmul.f32 -1.442695, %v1127_v45 }
 0x1b5   : > { %1484 = vpow2.f32 %v1399_v39 }
 0x1bb   : > { %v1017_v52 = vpop.permute.xlu0 %1016  ;;  %v1485_v48 = vpop.eup %1484 }
 0x1bc   : > { %v1021_v35 = vsel %vm1020_vm9, %v1017_v52, %v1019_v11  ;;  %v1135_v46 = vadd.f32 1.0, %v1485_v48 }
 0x1bd   : > { %v1116_v37 = vadd.f32 %v1021_v35, %v934_v17 }
 0x1be   : > { %1486 = vrcp.f32 %v1135_v46  ;;  %v1162_v38 = vand.u32 2147483648, %v1135_v46  ;;  %vm1156_vm13 = vweird.f32 %v1135_v46  ;;  %v1160_v26 = vand.u32 2147483647, %v1135_v46 }
 0x1bf   : > { %v1120_v60 = vadd.f32 %v1116_v37, %v1108_v53 }
 0x1c0   : > { %v1163_v12 = vor.u32 1.1754944e-38, %v1162_v38  ;;  %vm1161_vm15 = vcmp.eq.f32.partialorder %v1160_v26, 8.507059e+37 }
 0x1c1   : > { %v1122_v13 = vadd.f32 %v1120_v60, %v1118_v5 }
 0x1c3   : > { %v1126_v20 = vadd.f32 %v1125_v21, %v1122_v13 }
 0x1c4   : > { %v1487_v43 = vpop.eup %1486 }
 0x1c5   : > { %v1398_v16 = vmul.f32 -1.442695, %v1126_v20  ;;  %v1152_v29 = vmul.f32 %v1487_v43, %v1135_v46  ;;  %vm1157_vm12 = vweird.f32 %v1487_v43 }
 0x1c6   : > { %vm1158_vm14 = vmor %vm1156_vm13, %vm1157_vm12 }
 0x1c7   : > { %1488 = vpow2.f32 %v1398_v16  ;;  %v1153_v55 = vsub.f32 1.0, %v1152_v29 }
 0x1c9   : > { %v1154_v10 = vmul.f32 %v1487_v43, %v1153_v55 }
 0x1cb   : > { %v1155_v3 = vadd.f32 %v1487_v43, %v1154_v10 }
 0x1cd   : > { %v1489_v11 = vpop.eup %1488  ;;  %v1159_v14 = vsel %vm1158_vm14, %v1487_v43, %v1155_v3 }
 0x1ce   : > { %v1134_v49 = vadd.f32 1.0, %v1489_v11  ;;  %v1164_v19 = vsel %vm1161_vm15, %v1163_v12, %v1159_v14 }
 0x1cf   : > { %v1168_v41 = vrot.slane %v1164_v19, 7 }
 0x1d0   : > { %1490 = vrcp.f32 %v1134_v49  ;;  %v1147_v44 = vand.u32 2147483648, %v1134_v49  ;;  %v1145_v24 = vand.u32 2147483647, %v1134_v49  ;;  %vm1141_vm1 = vweird.f32 %v1134_v49 }
 0x1d2   : > { %v1148_v18 = vor.u32 1.1754944e-38, %v1147_v44  ;;  %vm1146_vm4 = vcmp.eq.f32.partialorder %v1145_v24, 8.507059e+37 }
 0x1d6   : > { %v1491_v8 = vpop.eup %1490 }
 0x1d7   : > { %v1137_v61 = vmul.f32 %v1491_v8, %v1134_v49  ;;  %vm1142_vm0 = vweird.f32 %v1491_v8 }
 0x1d8   : > { %vm1143_vm2 = vmor %vm1141_vm1, %vm1142_vm0 }
 0x1d9   : > { %v1138_v47 = vsub.f32 1.0, %v1137_v61 }
 0x1db   : > { %v1139_v32 = vmul.f32 %v1491_v8, %v1138_v47 }
 0x1dd   : > { %v1140_v6 = vadd.f32 %v1491_v8, %v1139_v32 }
 0x1df   : > { %v1144_v56 = vsel %vm1143_vm2, %v1491_v8, %v1140_v6 }
 0x1e0   : > { %v1149_v30 = vsel %vm1146_vm4, %v1148_v18, %v1144_v56 }
 0x1e1   : > { %v1170_v4 = vsel %vm1169_vm3, %v1149_v30, %v1168_v41 }
 0x1e2   : > { %1176 = vst.msk [vmem:[%s245_s23] sm:$0x3] %vm1174_vm5, %v1170_v4 }
 0x1e3   : > { %1594 = shalt.err (!%p1591_p11)
}
 0x1e4   : > { %1415 = dma.vmem_to_hbm [thread:$0]  (%p1751_p3), %s1191_s26, 32, %s1193_s29, %s1178_s24  }
 0x1e5 PF: > { %s3106_s15 = sld [smem:[#allocation15_spill]] }
 0x1e6   : > { %s3108_s22 = sld [smem:[#allocation18_spill]] }
 0x1eb   : > { %s1204_s16 = sand.u32 1, %s3106_s15  }
 0x1ec   : > { %p3109_p12 = scmp.ge.s32.totalorder %s3108_s22, 2  ;;  %s1205_s25 = scalar_lea.sflag [#allocation5], %s1204_s16 }
 0x1ee   : > { %p1429_p13 = pnand %p3109_p12, %p1720_p6 }
 0x1f0   : > { %p1430_p0 = pneg %p1429_p13 }
 0x1f2   : > { %1624 = dma.done.wait (%p1430_p0), %s1205_s25, 32  }
 0x1f3   : > { %1626 = vsyncadd (%p1430_p0), %s1205_s25, 4294967264  ;;  %s3110_s20 = sld [smem:[#allocation21_spill]] }
 0x1f4   : > { %s3111_s17 = sld [smem:[#allocation16_spill]] }
 0x1f5   : > { %s3112_s18 = sld [smem:[#allocation17_spill]] }
 0x1f6   : > { %s3113_s19 = sld [smem:[#allocation23_spill]] }
 0x1f9   : > { %p20_p5 = scmp.ge.s32.totalorder %s3110_s20, 4  }
 0x1fb   :  { %22 = sbr.rel (!%p20_p5) target bundleno = 13 (0xd), region = 93 }
 0x200   :  { %1211 = vsyncpa [#allocation4], 1 }
 0x201   :  { %1213 = vsyncpa [#allocation4 + $0x1], 1 }
 0x202   :  { %1214 = vsyncpa [#allocation9], 1 }
 0x203   :  { %1215 = vsyncpa [#allocation5], 1 }
 0x204   :  { %1217 = vsyncpa [#allocation5 + $0x1], 1 }
 0x205   :  { %1218 = vsyncpa [#allocation6], 1 }
 0x206   :  { %1220 = vsyncpa [#allocation6 + $0x1], 1 }

</bundles_post_ra>
